<compile_context>
chip_gen: v5e
topology: v5e:2x2
jax: 0.10.0
libtpu: 0.0.40
codegen_flags: <defaults>
</compile_context>

<pallas_src>
import functools

import jax
import jax.numpy as jnp
from jax.experimental import pallas as pl
from jax.experimental.pallas import tpu as pltpu

INPUT_DIM = 10       # forward reshapes Y to (-1, 1, 10), so input_dim == 10
HIDDEN_DIM = 32
OUT_DIM = 20
SET_SIZE = 100       # embeddings.reshape(-1, 100, hidden_dim)
SUB_B = 8            # sets per segment-sum sub-block (8 -> 800-row, sublane aligned)
SUB_ROWS = SUB_B * SET_SIZE
DEFAULT_TILE_B = 128


def _round_up(x, m):
    return ((x + m - 1) // m) * m


def _glr_kernel(y_ref,
                w1_ref, b1_ref, w2_ref, b2_ref,
                w3_ref, b3_ref, w4_ref, b4_ref,
                out_ref, agg_ref):
    """Forward pass for one batch tile of TILE_B sets.

    y_ref:   (TILE_B*100, 10)  flattened set elements for this tile
    w*_ref:  (in, out) weights, b*_ref: (1, out) biases (VMEM-resident)
    out_ref: (TILE_B, 20)
    agg_ref: (TILE_B, 32) VMEM scratch for the per-set sums
    """
    tb = out_ref.shape[0]          # TILE_B (static)
    y = y_ref[...]                 # (TILE_B*100, 10)

    # phi: Linear -> ReLU -> Linear -> ReLU, applied per set element (flat 2-D
    # matmuls give the best MXU utilization for these tiny K dims).
    h1 = jnp.dot(y, w1_ref[...], preferred_element_type=jnp.float32) + b1_ref[...]
    h1 = jnp.maximum(h1, 0.0)
    h2 = jnp.dot(h1, w2_ref[...], preferred_element_type=jnp.float32) + b2_ref[...]
    h2 = jnp.maximum(h2, 0.0)      # (TILE_B*100, 32)

    # Small reusable segment-sum matrix for 8 sets at a time: (8, 800), row r
    # has ones over columns [r*100, (r+1)*100).  Built once per grid step from
    # iotas (6.4K elements -> negligible VPU cost).
    col = jax.lax.broadcasted_iota(jnp.int32, (SUB_B, SUB_ROWS), 1)
    lo = jax.lax.broadcasted_iota(jnp.int32, (SUB_B, SUB_ROWS), 0) * SET_SIZE
    seg = ((col >= lo) & (col < lo + SET_SIZE)).astype(jnp.float32)

    # Per-set sum over the 100 elements of each set, 8 sets per MXU matmul.
    # All slices are static and sublane-aligned (800 % 8 == 0, 8 % 8 == 0).
    n_sub = tb // SUB_B
    for s in range(n_sub):
        blk = h2[s * SUB_ROWS:(s + 1) * SUB_ROWS, :]          # (800, 32)
        agg_ref[s * SUB_B:(s + 1) * SUB_B, :] = jnp.dot(
            seg, blk, preferred_element_type=jnp.float32)     # (8, 32)

    # rho: Linear -> ReLU -> Linear, batched over the whole tile.
    agg = agg_ref[...]                                        # (TILE_B, 32)
    r1 = jnp.dot(agg, w3_ref[...], preferred_element_type=jnp.float32) + b3_ref[...]
    r1 = jnp.maximum(r1, 0.0)
    stat = jnp.dot(r1, w4_ref[...], preferred_element_type=jnp.float32) + b4_ref[...]

    out_ref[...] = stat.astype(out_ref.dtype)


def init_params(key, input_dim=INPUT_DIM, hidden_dim=HIDDEN_DIM, out_dim=OUT_DIM):
    """PyTorch-style uniform(-1/sqrt(fan_in), 1/sqrt(fan_in)) init.

    Weights stored as (in_features, out_features) so forward is x @ W + b."""
    def linear(k, fan_in, fan_out):
        kw, kb = jax.random.split(k)
        bound = 1.0 / jnp.sqrt(fan_in)
        w = jax.random.uniform(kw, (fan_in, fan_out), jnp.float32, -bound, bound)
        b = jax.random.uniform(kb, (1, fan_out), jnp.float32, -bound, bound)
        return w, b

    k1, k2, k3, k4 = jax.random.split(key, 4)
    w1, b1 = linear(k1, input_dim, hidden_dim)    # phi[0]
    w2, b2 = linear(k2, hidden_dim, hidden_dim)   # phi[2]
    w3, b3 = linear(k3, hidden_dim, hidden_dim)   # rho[0]
    w4, b4 = linear(k4, hidden_dim, out_dim)      # rho[2]
    return (w1, b1, w2, b2, w3, b3, w4, b4)


@functools.partial(jax.jit, static_argnames=("tile_b",))
def glr_summary_forward(Y, w1, b1, w2, b2, w3, b3, w4, b4, *, tile_b=DEFAULT_TILE_B):
    """Pallas implementation of GLRSummary.forward. Returns (None, stat)."""
    # Mirrors the PyTorch forward: Y.reshape(-1, 1, 10) then groups of 100.
    y2d = Y.reshape(-1, INPUT_DIM).astype(jnp.float32)        # (B*100, 10)
    n = y2d.shape[0]
    assert n % SET_SIZE == 0, "total elements must be divisible by 100"
    batch = n // SET_SIZE

    # Effective batch tile: multiple of 8 (sublane / sub-block alignment),
    # no larger than the (rounded-up) batch.
    tile_b_eff = min(tile_b, _round_up(batch, 8))
    tile_b_eff = max(8, _round_up(tile_b_eff, 8))
    b_pad = _round_up(batch, tile_b_eff)
    if b_pad > batch:
        y2d = jnp.pad(y2d, ((0, (b_pad - batch) * SET_SIZE), (0, 0)))

    n_tiles = b_pad // tile_b_eff
    const = lambda i: (0, 0)   # weights/biases stay VMEM-resident

    stat = pl.pallas_call(
        _glr_kernel,
        out_shape=jax.ShapeDtypeStruct((b_pad, OUT_DIM), jnp.float32),
        grid_spec=pltpu.PrefetchScalarGridSpec(
            num_scalar_prefetch=0,
            grid=(n_tiles,),
            in_specs=[
                pl.BlockSpec((tile_b_eff * SET_SIZE, INPUT_DIM), lambda i: (i, 0)),
                pl.BlockSpec((INPUT_DIM, HIDDEN_DIM), const),
                pl.BlockSpec((1, HIDDEN_DIM), const),
                pl.BlockSpec((HIDDEN_DIM, HIDDEN_DIM), const),
                pl.BlockSpec((1, HIDDEN_DIM), const),
                pl.BlockSpec((HIDDEN_DIM, HIDDEN_DIM), const),
                pl.BlockSpec((1, HIDDEN_DIM), const),
                pl.BlockSpec((HIDDEN_DIM, OUT_DIM), const),
                pl.BlockSpec((1, OUT_DIM), const),
            ],
            out_specs=pl.BlockSpec((tile_b_eff, OUT_DIM), lambda i: (i, 0)),
            scratch_shapes=[pltpu.VMEM((tile_b_eff, HIDDEN_DIM), jnp.float32)],
        ),
        compiler_params=pltpu.CompilerParams(
            dimension_semantics=("parallel",)),
    )(y2d, w1, b1, w2, b2, w3, b3, w4, b4)

    return None, stat[:batch]


def _reference_forward(Y, w1, b1, w2, b2, w3, b3, w4, b4):
    """Pure-JAX reference mirroring the PyTorch module exactly."""
    y = Y.reshape(-1, 1, INPUT_DIM).astype(jnp.float32)
    h = jnp.maximum(y @ w1 + b1, 0.0)
    h = jnp.maximum(h @ w2 + b2, 0.0)
    emb = h.reshape(-1, SET_SIZE, HIDDEN_DIM)
    agg = emb.sum(axis=1)
    r = jnp.maximum(agg @ w3 + b3, 0.0)
    stat = r @ w4 + b4
    return None, stat


if __name__ == "__main__":
    key = jax.random.PRNGKey(0)
    k_param, k_data, k_data2, k_data3 = jax.random.split(key, 4)

    params = init_params(k_param)

    # Check 1: small deterministic input, batch=2 sets of 100 elements of dim 10.
    B = 2
    Y = jax.random.normal(k_data, (B, SET_SIZE, INPUT_DIM), dtype=jnp.float32)
    _, stat = glr_summary_forward(Y, *params)
    stat = jax.block_until_ready(stat)
    _, stat_ref = _reference_forward(Y, *params)
    assert stat.shape == (B, OUT_DIM)
    assert jnp.allclose(stat, stat_ref, atol=1e-4, rtol=1e-4), (
        "Pallas kernel mismatch vs reference (B=2)")

    # Check 2: multiple grid steps (B=16, tile_b=8 -> grid=(2,)).
    B2 = 16
    Y2 = jax.random.normal(k_data2, (B2, SET_SIZE, INPUT_DIM), dtype=jnp.float32)
    _, stat2 = glr_summary_forward(Y2, *params, tile_b=8)
    stat2 = jax.block_until_ready(stat2)
    _, stat2_ref = _reference_forward(Y2, *params)
    assert stat2.shape == (B2, OUT_DIM)
    assert jnp.allclose(stat2, stat2_ref, atol=1e-4, rtol=1e-4), (
        "Pallas kernel mismatch vs reference (B=16, tiled)")

    # Check 3: batch padding path (B=12, tile_b=8 -> b_pad=16, padded sets sliced off).
    B3 = 12
    Y3 = jax.random.normal(k_data3, (B3, SET_SIZE, INPUT_DIM), dtype=jnp.float32)
    _, stat3 = glr_summary_forward(Y3, *params, tile_b=8)
    stat3 = jax.block_until_ready(stat3)
    _, stat3_ref = _reference_forward(Y3, *params)
    assert stat3.shape == (B3, OUT_DIM)
    assert jnp.allclose(stat3, stat3_ref, atol=1e-4, rtol=1e-4), (
        "Pallas kernel mismatch vs reference (B=12, padded)")

    print("KERNEL_OK")
</pallas_src>

<mosaic_0001>
module attributes {stable_mosaic.version = 11 : i64} {
  func.func @_glr_kernel(%arg0: i32, %arg1: memref<800x10xf32, #tpu.memory_space<vmem>>, %arg2: memref<10x32xf32, #tpu.memory_space<vmem>>, %arg3: memref<1x32xf32, #tpu.memory_space<vmem>>, %arg4: memref<32x32xf32, #tpu.memory_space<vmem>>, %arg5: memref<1x32xf32, #tpu.memory_space<vmem>>, %arg6: memref<32x32xf32, #tpu.memory_space<vmem>>, %arg7: memref<1x32xf32, #tpu.memory_space<vmem>>, %arg8: memref<32x20xf32, #tpu.memory_space<vmem>>, %arg9: memref<1x20xf32, #tpu.memory_space<vmem>>, %arg10: memref<8x20xf32, #tpu.memory_space<vmem>>, %arg11: memref<8x32xf32, #tpu.memory_space<vmem>>) attributes {dimension_semantics = [#tpu.dimension_semantics<parallel>], iteration_bounds = array<i64: 1>, scalar_prefetch = 0 : i64, scratch_operands = 1 : i64, tpu.core_type = #tpu.core_type<tc>, window_params = [{transform_indices = @transform_0, window_bounds = array<i64: 800, 10>}, {pipeline_mode = #tpu.pipeline_mode<synchronous>, transform_indices = @transform_1, window_bounds = array<i64: 10, 32>}, {pipeline_mode = #tpu.pipeline_mode<synchronous>, transform_indices = @transform_2, window_bounds = array<i64: 1, 32>}, {pipeline_mode = #tpu.pipeline_mode<synchronous>, transform_indices = @transform_3, window_bounds = array<i64: 32, 32>}, {pipeline_mode = #tpu.pipeline_mode<synchronous>, transform_indices = @transform_4, window_bounds = array<i64: 1, 32>}, {pipeline_mode = #tpu.pipeline_mode<synchronous>, transform_indices = @transform_5, window_bounds = array<i64: 32, 32>}, {pipeline_mode = #tpu.pipeline_mode<synchronous>, transform_indices = @transform_6, window_bounds = array<i64: 1, 32>}, {pipeline_mode = #tpu.pipeline_mode<synchronous>, transform_indices = @transform_7, window_bounds = array<i64: 32, 20>}, {pipeline_mode = #tpu.pipeline_mode<synchronous>, transform_indices = @transform_8, window_bounds = array<i64: 1, 20>}, {transform_indices = @transform_9, window_bounds = array<i64: 8, 20>}]} {
    %c0 = arith.constant 0 : index
    %c0_0 = arith.constant 0 : index
    %0 = vector.load %arg1[%c0, %c0_0] : memref<800x10xf32, #tpu.memory_space<vmem>>, vector<800x10xf32>
    %c0_1 = arith.constant 0 : index
    %c0_2 = arith.constant 0 : index
    %1 = vector.load %arg2[%c0_1, %c0_2] : memref<10x32xf32, #tpu.memory_space<vmem>>, vector<10x32xf32>
    %cst = arith.constant dense<0.000000e+00> : vector<800x32xf32>
    %2 = tpu.matmul %0, %1, %cst {dimension_numbers = #tpu.dot_dimension_numbers<[1], [0], [0], [1], [0, 0, 1, 1], [], []>} : vector<800x10xf32>, vector<10x32xf32>, vector<800x32xf32> -> vector<800x32xf32>
    %c0_3 = arith.constant 0 : index
    %c0_4 = arith.constant 0 : index
    %3 = vector.load %arg3[%c0_3, %c0_4] : memref<1x32xf32, #tpu.memory_space<vmem>>, vector<1x32xf32>
    %4 = vector.broadcast %3 : vector<1x32xf32> to vector<800x32xf32>
    %5 = arith.addf %2, %4 : vector<800x32xf32>
    %cst_5 = arith.constant 0.000000e+00 : f32
    %6 = vector.broadcast %cst_5 : f32 to vector<800x32xf32>
    %7 = arith.maximumf %5, %6 : vector<800x32xf32>
    %c0_6 = arith.constant 0 : index
    %c0_7 = arith.constant 0 : index
    %8 = vector.load %arg4[%c0_6, %c0_7] : memref<32x32xf32, #tpu.memory_space<vmem>>, vector<32x32xf32>
    %cst_8 = arith.constant dense<0.000000e+00> : vector<800x32xf32>
    %9 = tpu.matmul %7, %8, %cst_8 {dimension_numbers = #tpu.dot_dimension_numbers<[1], [0], [0], [1], [0, 0, 1, 1], [], []>} : vector<800x32xf32>, vector<32x32xf32>, vector<800x32xf32> -> vector<800x32xf32>
    %c0_9 = arith.constant 0 : index
    %c0_10 = arith.constant 0 : index
    %10 = vector.load %arg5[%c0_9, %c0_10] : memref<1x32xf32, #tpu.memory_space<vmem>>, vector<1x32xf32>
    %11 = vector.broadcast %10 : vector<1x32xf32> to vector<800x32xf32>
    %12 = arith.addf %9, %11 : vector<800x32xf32>
    %cst_11 = arith.constant 0.000000e+00 : f32
    %13 = vector.broadcast %cst_11 : f32 to vector<800x32xf32>
    %14 = arith.maximumf %12, %13 : vector<800x32xf32>
    %15 = tpu.iota {dimensions = array<i32: 1>} : vector<8x800xi32>
    %16 = tpu.iota {dimensions = array<i32: 0>} : vector<8x800xi32>
    %c100_i32 = arith.constant 100 : i32
    %17 = vector.broadcast %c100_i32 : i32 to vector<8x800xi32>
    %18 = arith.muli %16, %17 : vector<8x800xi32>
    %19 = arith.cmpi sge, %15, %18 : vector<8x800xi32>
    %c100_i32_12 = arith.constant 100 : i32
    %20 = vector.broadcast %c100_i32_12 : i32 to vector<8x800xi32>
    %21 = arith.addi %18, %20 : vector<8x800xi32>
    %22 = arith.cmpi slt, %15, %21 : vector<8x800xi32>
    %23 = arith.andi %19, %22 : vector<8x800xi1>
    %24 = arith.extui %23 : vector<8x800xi1> to vector<8x800xi32>
    %25 = arith.sitofp %24 : vector<8x800xi32> to vector<8x800xf32>
    %cst_13 = arith.constant dense<0.000000e+00> : vector<8x32xf32>
    %26 = tpu.matmul %25, %14, %cst_13 {dimension_numbers = #tpu.dot_dimension_numbers<[1], [0], [0], [1], [0, 0, 1, 1], [], []>} : vector<8x800xf32>, vector<800x32xf32>, vector<8x32xf32> -> vector<8x32xf32>
    %c0_14 = arith.constant 0 : index
    %c0_15 = arith.constant 0 : index
    %27 = vector.load %arg11[%c0_14, %c0_15] : memref<8x32xf32, #tpu.memory_space<vmem>>, vector<8x32xf32>
    tpu.vector_store %arg11[%c0_14, %c0_15], %26 {strides = array<i32>} : memref<8x32xf32, #tpu.memory_space<vmem>>, vector<8x32xf32>,
    %c0_16 = arith.constant 0 : index
    %c0_17 = arith.constant 0 : index
    %28 = vector.load %arg11[%c0_16, %c0_17] : memref<8x32xf32, #tpu.memory_space<vmem>>, vector<8x32xf32>
    %c0_18 = arith.constant 0 : index
    %c0_19 = arith.constant 0 : index
    %29 = vector.load %arg6[%c0_18, %c0_19] : memref<32x32xf32, #tpu.memory_space<vmem>>, vector<32x32xf32>
    %cst_20 = arith.constant dense<0.000000e+00> : vector<8x32xf32>
    %30 = tpu.matmul %28, %29, %cst_20 {dimension_numbers = #tpu.dot_dimension_numbers<[1], [0], [0], [1], [0, 0, 1, 1], [], []>} : vector<8x32xf32>, vector<32x32xf32>, vector<8x32xf32> -> vector<8x32xf32>
    %c0_21 = arith.constant 0 : index
    %c0_22 = arith.constant 0 : index
    %31 = vector.load %arg7[%c0_21, %c0_22] : memref<1x32xf32, #tpu.memory_space<vmem>>, vector<1x32xf32>
    %32 = vector.broadcast %31 : vector<1x32xf32> to vector<8x32xf32>
    %33 = arith.addf %30, %32 : vector<8x32xf32>
    %cst_23 = arith.constant 0.000000e+00 : f32
    %34 = vector.broadcast %cst_23 : f32 to vector<8x32xf32>
    %35 = arith.maximumf %33, %34 : vector<8x32xf32>
    %c0_24 = arith.constant 0 : index
    %c0_25 = arith.constant 0 : index
    %36 = vector.load %arg8[%c0_24, %c0_25] : memref<32x20xf32, #tpu.memory_space<vmem>>, vector<32x20xf32>
    %cst_26 = arith.constant dense<0.000000e+00> : vector<8x20xf32>
    %37 = tpu.matmul %35, %36, %cst_26 {dimension_numbers = #tpu.dot_dimension_numbers<[1], [0], [0], [1], [0, 0, 1, 1], [], []>} : vector<8x32xf32>, vector<32x20xf32>, vector<8x20xf32> -> vector<8x20xf32>
    %c0_27 = arith.constant 0 : index
    %c0_28 = arith.constant 0 : index
    %38 = vector.load %arg9[%c0_27, %c0_28] : memref<1x20xf32, #tpu.memory_space<vmem>>, vector<1x20xf32>
    %39 = vector.broadcast %38 : vector<1x20xf32> to vector<8x20xf32>
    %40 = arith.addf %37, %39 : vector<8x20xf32>
    %c0_29 = arith.constant 0 : index
    %c0_30 = arith.constant 0 : index
    %41 = vector.load %arg10[%c0_29, %c0_30] : memref<8x20xf32, #tpu.memory_space<vmem>>, vector<8x20xf32>
    tpu.vector_store %arg10[%c0_29, %c0_30], %40 {strides = array<i32>} : memref<8x20xf32, #tpu.memory_space<vmem>>, vector<8x20xf32>,
    return
  }
  func.func @transform_0(%arg0: i32) -> (i32, i32) {
    %c0_i32 = arith.constant 0 : i32
    %c0_i32_0 = arith.constant 0 : i32
    return %arg0, %c0_i32 : i32, i32
  }
  func.func @transform_1(%arg0: i32) -> (i32, i32) {
    %c0_i32 = arith.constant 0 : i32
    %c0_i32_0 = arith.constant 0 : i32
    %c0_i32_1 = arith.constant 0 : i32
    return %c0_i32, %c0_i32_0 : i32, i32
  }
  func.func @transform_2(%arg0: i32) -> (i32, i32) {
    %c0_i32 = arith.constant 0 : i32
    %c0_i32_0 = arith.constant 0 : i32
    %c0_i32_1 = arith.constant 0 : i32
    return %c0_i32, %c0_i32_0 : i32, i32
  }
  func.func @transform_3(%arg0: i32) -> (i32, i32) {
    %c0_i32 = arith.constant 0 : i32
    %c0_i32_0 = arith.constant 0 : i32
    %c0_i32_1 = arith.constant 0 : i32
    return %c0_i32, %c0_i32_0 : i32, i32
  }
  func.func @transform_4(%arg0: i32) -> (i32, i32) {
    %c0_i32 = arith.constant 0 : i32
    %c0_i32_0 = arith.constant 0 : i32
    %c0_i32_1 = arith.constant 0 : i32
    return %c0_i32, %c0_i32_0 : i32, i32
  }
  func.func @transform_5(%arg0: i32) -> (i32, i32) {
    %c0_i32 = arith.constant 0 : i32
    %c0_i32_0 = arith.constant 0 : i32
    %c0_i32_1 = arith.constant 0 : i32
    return %c0_i32, %c0_i32_0 : i32, i32
  }
  func.func @transform_6(%arg0: i32) -> (i32, i32) {
    %c0_i32 = arith.constant 0 : i32
    %c0_i32_0 = arith.constant 0 : i32
    %c0_i32_1 = arith.constant 0 : i32
    return %c0_i32, %c0_i32_0 : i32, i32
  }
  func.func @transform_7(%arg0: i32) -> (i32, i32) {
    %c0_i32 = arith.constant 0 : i32
    %c0_i32_0 = arith.constant 0 : i32
    %c0_i32_1 = arith.constant 0 : i32
    return %c0_i32, %c0_i32_0 : i32, i32
  }
  func.func @transform_8(%arg0: i32) -> (i32, i32) {
    %c0_i32 = arith.constant 0 : i32
    %c0_i32_0 = arith.constant 0 : i32
    %c0_i32_1 = arith.constant 0 : i32
    return %c0_i32, %c0_i32_0 : i32, i32
  }
  func.func @transform_9(%arg0: i32) -> (i32, i32) {
    %c0_i32 = arith.constant 0 : i32
    %c0_i32_0 = arith.constant 0 : i32
    return %arg0, %c0_i32 : i32, i32
  }
}

</mosaic_0001>

<bundles_post_ra>
// kernel: glr_summary_forward.1
= control target key start
LH: loop header
LB: loop body
LE: loop exit
PB: predicated region body
PF: predicated region fallthrough
CT: control target
= control target key end

     0   :  { %vm439_vm0 = vcmask 1041408   ;;  %vm138_vm1 = vcmask 80896   ;;  %vm868_vm2 = vcmask 261120   ;;  %s3165_s1 = inlined_call_operand.vmem [shape: f32[10,32], index: 1, kind: input, shape index: {}]   ;;  %s3166_s0 = inlined_call_operand.vmem [shape: f32[800,10], index: 0, kind: input, shape index: {}]   ;;  %s3167_s2 = inlined_call_operand.vmem [shape: f32[1,32], index: 2, kind: input, shape index: {}]   ;;  %s3168_s3 = inlined_call_operand.vmem [shape: f32[32,32], index: 3, kind: input, shape index: {}]   ;;  %s3169_s4 = inlined_call_operand.vmem [shape: f32[1,32], index: 4, kind: input, shape index: {}]   ;;  %s3170_s6 = inlined_call_operand.vmem [shape: f32[1,32], index: 6, kind: input, shape index: {}]   ;;  %s3171_s5 = inlined_call_operand.vmem [shape: f32[32,32], index: 5, kind: input, shape index: {}]   ;;  %s3172_s7 = inlined_call_operand.vmem [shape: f32[32,20], index: 7, kind: input, shape index: {}]   ;;  %s3173_s8 = inlined_call_operand.vmem [shape: f32[1,20], index: 8, kind: input, shape index: {}]   ;;  %s3174_s9 = inlined_call_operand.vmem [shape: f32[8,20], index: 9, kind: output, shape index: {}]  }
   0x1   :  { %v133_v0 = vld [vmem:[%s3165_s1 + $0x8] sm:$0x3]  ;;  %v132_v1 = vld [vmem:[%s3165_s1] sm:$0xff]  ;;  %v34_v4 = vld [vmem:[%s3166_s0 + $0x10] sm:$0xff] }
   0x2   :  { %1847 = vmatpush.msk.msra.mxu0 %vm439_vm0, %v133_v0  ;;  %v32_v2 = vld [vmem:[%s3166_s0] sm:$0xff]  ;;  %2064 = vmatpush.msk.msra.mxu2 %vm439_vm0, %v133_v0  ;;  %v33_v3 = vld [vmem:[%s3166_s0 + $0x8] sm:$0xff]  ;;  %v35_v5 = vld [vmem:[%s3166_s0 + $0x18] sm:$0xff] }
   0x3   :  { %v36_v6 = vld [vmem:[%s3166_s0 + $0x20] sm:$0xff]  ;;  %v37_v7 = vld [vmem:[%s3166_s0 + $0x28] sm:$0xff]  ;;  %v38_v8 = vld [vmem:[%s3166_s0 + $0x30] sm:$0xff] }
   0x4   :  { %458 = vmatpush.msra.mxu0 %v132_v1  ;;  %2065 = vmatpush.msra.mxu2 %v132_v1  ;;  %v39_v9 = vld [vmem:[%s3166_s0 + $0x38] sm:$0xff]  ;;  %v40_v10 = vld [vmem:[%s3166_s0 + $0x40] sm:$0xff]  ;;  %v41_v12 = vld [vmem:[%s3166_s0 + $0x48] sm:$0xff] }
   0x5   :  { %1848 = vmatmul.msk.f32.vlgmr.msra.gmra.mxu0 %vm138_vm1, %v32_v2  ;;  %v88_v11 = vld [vmem:[%s3166_s0 + $0x1c0] sm:$0xff]  ;;  %v89_v13 = vld [vmem:[%s3166_s0 + $0x1c8] sm:$0xff]  ;;  %v42_v14 = vld [vmem:[%s3166_s0 + $0x50] sm:$0xff] }
   0x6   :  { %1904 = vmatmul.msk.f32.vlgmr.msra.gmra.mxu2 %vm138_vm1, %v88_v11  ;;  %v90_v15 = vld [vmem:[%s3166_s0 + $0x1d0] sm:$0xff]  ;;  %v43_v16 = vld [vmem:[%s3166_s0 + $0x58] sm:$0xff]  ;;  %v44_v20 = vld [vmem:[%s3166_s0 + $0x60] sm:$0xff] }
   0x7   :  { %v91_v17 = vld [vmem:[%s3166_s0 + $0x1d8] sm:$0xff]  ;;  %v862_v19 = vld [vmem:[%s3168_s3 + $0x10] sm:$0xff]  ;;  %v861_v21 = vld [vmem:[%s3168_s3 + $0x8] sm:$0xff] }
   0x8   :  { %v863_v18 = vld [vmem:[%s3168_s3 + $0x18] sm:$0xff]  ;;  %v92_v22 = vld [vmem:[%s3166_s0 + $0x1e0] sm:$0xff]  ;;  %v45_v24 = vld [vmem:[%s3166_s0 + $0x68] sm:$0xff] }
   0x9   :  { %1181 = vmatpush.msra.mxu1 %v863_v18  ;;  %2066 = vmatpush.msra.mxu3 %v863_v18  ;;  %v860_v23 = vld [vmem:[%s3168_s3] sm:$0xff]  ;;  %v93_v25 = vld [vmem:[%s3166_s0 + $0x1e8] sm:$0xff]  ;;  %v46_v26 = vld [vmem:[%s3166_s0 + $0x70] sm:$0xff] }
   0xa   :  { %v94_v27 = vld [vmem:[%s3166_s0 + $0x1f0] sm:$0xff]  ;;  %v47_v28 = vld [vmem:[%s3166_s0 + $0x78] sm:$0xff]  ;;  %v2247_v30 = vld [vmem:[%s3167_s2] ss:$0 sm:$0xff] }
   0xb   :  { %1182 = vmatpush.msra.mxu1 %v862_v19  ;;  %2067 = vmatpush.msra.mxu3 %v862_v19  ;;  %v95_v29 = vld [vmem:[%s3166_s0 + $0x1f8] sm:$0xff]  ;;  %v48_v32 = vld [vmem:[%s3166_s0 + $0x80] sm:$0xff]  ;;  %v49_v37 = vld [vmem:[%s3166_s0 + $0x88] sm:$0xff] }
   0xc   :  { %v96_v34 = vld [vmem:[%s3166_s0 + $0x200] sm:$0xff]  ;;  %v97_v39 = vld [vmem:[%s3166_s0 + $0x208] sm:$0xff]  ;;  %v50_v42 = vld [vmem:[%s3166_s0 + $0x90] sm:$0xff] }
   0xd   :  { %1849 = vmatmul.msk.f32.gmra.mxu0 %vm138_vm1, %v33_v3  ;;  %1183 = vmatpush.msra.mxu1 %v861_v21  ;;  %v98_v44 = vld [vmem:[%s3166_s0 + $0x210] sm:$0xff]  ;;  %v51_v47 = vld [vmem:[%s3166_s0 + $0x98] sm:$0xff]  ;;  %v52_v52 = vld [vmem:[%s3166_s0 + $0xa0] sm:$0xff] }
   0xe   :  { %1905 = vmatmul.msk.f32.gmra.mxu2 %vm138_vm1, %v89_v13  ;;  %2068 = vmatpush.msra.mxu3 %v861_v21  ;;  %v99_v49 = vld [vmem:[%s3166_s0 + $0x218] sm:$0xff]  ;;  %v100_v54 = vld [vmem:[%s3166_s0 + $0x220] sm:$0xff]  ;;  %v53_v57 = vld [vmem:[%s3166_s0 + $0xa8] sm:$0xff] }
   0xf   :  { %1184 = vmatpush.msra.mxu1 %v860_v23  ;;  %v101_v59 = vld [vmem:[%s3166_s0 + $0x228] sm:$0xff]  ;;  %v54_v62 = vld [vmem:[%s3166_s0 + $0xb0] sm:$0xff]  ;;  %v55_v3 = vld [vmem:[%s3166_s0 + $0xb8] sm:$0xff] }
  0x10   :  { %2069 = vmatpush.msra.mxu3 %v860_v23  ;;  %v102_v0 = vld [vmem:[%s3166_s0 + $0x230] sm:$0xff]  ;;  %v105_v18 = vld [vmem:[%s3166_s0 + $0x248] sm:$0xff] }
  0x11   :  { %v58_v23 = vld [vmem:[%s3166_s0 + $0xd0] sm:$0xff] }
  0x15   :  { %1850 = vmatmul.msk.f32.gmra.mxu0 %vm138_vm1, %v34_v4 }
  0x16   :  { %1906 = vmatmul.msk.f32.gmra.mxu2 %vm138_vm1, %v90_v15  ;;  %v57_v15 = vld [vmem:[%s3166_s0 + $0xc8] sm:$0xff] }
  0x1d   :  { %1851 = vmatmul.msk.f32.gmra.mxu0 %vm138_vm1, %v35_v5  ;;  %v103_v5 = vld [vmem:[%s3166_s0 + $0x238] sm:$0xff] }
  0x1e   :  { %1907 = vmatmul.msk.f32.gmra.mxu2 %vm138_vm1, %v91_v17 }
  0x25   :  { %1852 = vmatmul.msk.f32.gmra.mxu0 %vm138_vm1, %v36_v6 }
  0x26   :  { %1908 = vmatmul.msk.f32.gmra.mxu2 %vm138_vm1, %v92_v22 }
  0x2d   :  { %1853 = vmatmul.msk.f32.gmra.mxu0 %vm138_vm1, %v37_v7 }
  0x2e   :  { %1909 = vmatmul.msk.f32.gmra.mxu2 %vm138_vm1, %v93_v25 }
  0x35   :  { %1854 = vmatmul.msk.f32.gmra.mxu0 %vm138_vm1, %v38_v8  ;;  %v56_v8 = vld [vmem:[%s3166_s0 + $0xc0] sm:$0xff] }
  0x36   :  { %1910 = vmatmul.msk.f32.gmra.mxu2 %vm138_vm1, %v94_v27 }
  0x3d   :  { %1855 = vmatmul.msk.f32.gmra.mxu0 %vm138_vm1, %v39_v9 }
  0x3e   :  { %1911 = vmatmul.msk.f32.gmra.mxu2 %vm138_vm1, %v95_v29 }
  0x45   :  { %1856 = vmatmul.msk.f32.gmra.mxu0 %vm138_vm1, %v40_v10  ;;  %v104_v10 = vld [vmem:[%s3166_s0 + $0x240] sm:$0xff] }
  0x46   :  { %1912 = vmatmul.msk.f32.gmra.mxu2 %vm138_vm1, %v96_v34 }
  0x4d   :  { %1857 = vmatmul.msk.f32.gmra.mxu0 %vm138_vm1, %v41_v12 }
  0x4e   :  { %1913 = vmatmul.msk.f32.gmra.mxu2 %vm138_vm1, %v97_v39 }
  0x55   :  { %1858 = vmatmul.msk.f32.gmra.mxu0 %vm138_vm1, %v42_v14 }
  0x56   :  { %1914 = vmatmul.msk.f32.gmra.mxu2 %vm138_vm1, %v98_v44 }
  0x5d   :  { %1859 = vmatmul.msk.f32.gmra.mxu0 %vm138_vm1, %v43_v16 }
  0x5e   :  { %1915 = vmatmul.msk.f32.gmra.mxu2 %vm138_vm1, %v99_v49 }
  0x65   :  { %1860 = vmatmul.msk.f32.gmra.mxu0 %vm138_vm1, %v44_v20 }
  0x66   :  { %1916 = vmatmul.msk.f32.gmra.mxu2 %vm138_vm1, %v100_v54 }
  0x6d   :  { %1861 = vmatmul.msk.f32.gmra.mxu0 %vm138_vm1, %v45_v24 }
  0x6e   :  { %1917 = vmatmul.msk.f32.gmra.mxu2 %vm138_vm1, %v101_v59  ;;  %v110_v59 = vld [vmem:[%s3166_s0 + $0x270] sm:$0xff] }
  0x75   :  { %1862 = vmatmul.msk.f32.gmra.mxu0 %vm138_vm1, %v46_v26  ;;  %v106_v26 = vld [vmem:[%s3166_s0 + $0x250] sm:$0xff] }
  0x76   :  { %1918 = vmatmul.msk.f32.gmra.mxu2 %vm138_vm1, %v102_v0  ;;  %v63_v0 = vld [vmem:[%s3166_s0 + $0xf8] sm:$0xff] }
  0x7d   :  { %1863 = vmatmul.msk.f32.gmra.mxu0 %vm138_vm1, %v47_v28 }
  0x7e   :  { %1919 = vmatmul.msk.f32.gmra.mxu2 %vm138_vm1, %v103_v5 }
  0x82   :  { %v460_v31 = vpop.f32.mrf.mxu0 }
  0x83   :  { %v461_v33 = vadd.f32 %v2247_v30, %v460_v31 }
  0x85   :  { %v760_v35 = vmax.f32 %v461_v33, 0.0  ;;  %1864 = vmatmul.msk.f32.gmra.mxu0 %vm138_vm1, %v48_v32  ;;  %v59_v32 = vld [vmem:[%s3166_s0 + $0xd8] sm:$0xff] }
  0x86   :  { %1920 = vmatmul.msk.f32.gmra.mxu2 %vm138_vm1, %v104_v10 }
  0x87   :  { %1948 = vmatmul.msk.f32.vlgmr.msra.gmra.mxu1 %vm868_vm2, %v760_v35  ;;  %v107_v35 = vld [vmem:[%s3166_s0 + $0x258] sm:$0xff] }
  0x89   :  { %v628_v12 = vpop.f32.mrf.mxu2 }
  0x8a   :  { %v463_v36 = vpop.f32.mrf.mxu0  ;;  %v629_v13 = vadd.f32 %v2247_v30, %v628_v12 }
  0x8b   :  { %v464_v38 = vadd.f32 %v2247_v30, %v463_v36 }
  0x8c   :  { %v816_v16 = vmax.f32 %v629_v13, 0.0 }
  0x8d   :  { %v761_v40 = vmax.f32 %v464_v38, 0.0  ;;  %1865 = vmatmul.msk.f32.gmra.mxu0 %vm138_vm1, %v49_v37 }
  0x8e   :  { %1921 = vmatmul.msk.f32.gmra.mxu2 %vm138_vm1, %v105_v18  ;;  %2004 = vmatmul.msk.f32.vlgmr.msra.gmra.mxu3 %vm868_vm2, %v816_v16 }
  0x8f   :  { %1949 = vmatmul.msk.f32.gmra.mxu1 %vm868_vm2, %v761_v40  ;;  %v60_v40 = vld [vmem:[%s3166_s0 + $0xe0] sm:$0xff] }
  0x91   :  { %v631_v20 = vpop.f32.mrf.mxu2 }
  0x92   :  { %v466_v41 = vpop.f32.mrf.mxu0  ;;  %v632_v21 = vadd.f32 %v2247_v30, %v631_v20  ;;  %v113_v20 = vld [vmem:[%s3166_s0 + $0x288] sm:$0xff] }
  0x93   :  { %v467_v43 = vadd.f32 %v2247_v30, %v466_v41 }
  0x94   :  { %v817_v24 = vmax.f32 %v632_v21, 0.0 }
  0x95   :  { %v762_v45 = vmax.f32 %v467_v43, 0.0  ;;  %1866 = vmatmul.msk.f32.gmra.mxu0 %vm138_vm1, %v50_v42  ;;  %v108_v43 = vld [vmem:[%s3166_s0 + $0x260] sm:$0xff] }
  0x96   :  { %1922 = vmatmul.msk.f32.gmra.mxu2 %vm138_vm1, %v106_v26  ;;  %2005 = vmatmul.msk.f32.gmra.mxu3 %vm868_vm2, %v817_v24  ;;  %v66_v26 = vld [vmem:[%s3166_s0 + $0x110] sm:$0xff] }
  0x97   :  { %1950 = vmatmul.msk.f32.gmra.mxu1 %vm868_vm2, %v762_v45 }
  0x99   :  { %v634_v28 = vpop.f32.mrf.mxu2 }
  0x9a   :  { %v469_v46 = vpop.f32.mrf.mxu0  ;;  %v635_v29 = vadd.f32 %v2247_v30, %v634_v28 }
  0x9b   :  { %v470_v48 = vadd.f32 %v2247_v30, %v469_v46 }
  0x9c   :  { %v818_v33 = vmax.f32 %v635_v29, 0.0  ;;  %v114_v29 = vld [vmem:[%s3166_s0 + $0x290] sm:$0xff] }
  0x9d   :  { %v763_v50 = vmax.f32 %v470_v48, 0.0  ;;  %1867 = vmatmul.msk.f32.gmra.mxu0 %vm138_vm1, %v51_v47  ;;  %v61_v48 = vld [vmem:[%s3166_s0 + $0xe8] sm:$0xff] }
  0x9e   :  { %1923 = vmatmul.msk.f32.gmra.mxu2 %vm138_vm1, %v107_v35  ;;  %2006 = vmatmul.msk.f32.gmra.mxu3 %vm868_vm2, %v818_v33 }
  0x9f   :  { %1951 = vmatmul.msk.f32.gmra.mxu1 %vm868_vm2, %v763_v50 }
  0xa1   :  { %v637_v37 = vpop.f32.mrf.mxu2 }
  0xa2   :  { %v472_v51 = vpop.f32.mrf.mxu0  ;;  %v638_v38 = vadd.f32 %v2247_v30, %v637_v37 }
  0xa3   :  { %v473_v53 = vadd.f32 %v2247_v30, %v472_v51  ;;  %v109_v51 = vld [vmem:[%s3166_s0 + $0x268] sm:$0xff] }
  0xa4   :  { %v819_v41 = vmax.f32 %v638_v38, 0.0 }
  0xa5   :  { %v764_v55 = vmax.f32 %v473_v53, 0.0  ;;  %1868 = vmatmul.msk.f32.gmra.mxu0 %vm138_vm1, %v52_v52 }
  0xa6   :  { %1924 = vmatmul.msk.f32.gmra.mxu2 %vm138_vm1, %v108_v43  ;;  %2007 = vmatmul.msk.f32.gmra.mxu3 %vm868_vm2, %v819_v41 }
  0xa7   :  { %1952 = vmatmul.msk.f32.gmra.mxu1 %vm868_vm2, %v764_v55 }
  0xa9   :  { %v640_v45 = vpop.f32.mrf.mxu2 }
  0xaa   :  { %v475_v56 = vpop.f32.mrf.mxu0  ;;  %v641_v46 = vadd.f32 %v2247_v30, %v640_v45  ;;  %v68_v45 = vld [vmem:[%s3166_s0 + $0x120] sm:$0xff] }
  0xab   :  { %v476_v58 = vadd.f32 %v2247_v30, %v475_v56  ;;  %v62_v56 = vld [vmem:[%s3166_s0 + $0xf0] sm:$0xff] }
  0xac   :  { %v820_v49 = vmax.f32 %v641_v46, 0.0 }
  0xad   :  { %v765_v60 = vmax.f32 %v476_v58, 0.0  ;;  %1869 = vmatmul.msk.f32.gmra.mxu0 %vm138_vm1, %v53_v57 }
  0xae   :  { %1925 = vmatmul.msk.f32.gmra.mxu2 %vm138_vm1, %v109_v51  ;;  %2008 = vmatmul.msk.f32.gmra.mxu3 %vm868_vm2, %v820_v49 }
  0xaf   :  { %1953 = vmatmul.msk.f32.gmra.mxu1 %vm868_vm2, %v765_v60 }
  0xb1   :  { %v643_v53 = vpop.f32.mrf.mxu2 }
  0xb2   :  { %v478_v61 = vpop.f32.mrf.mxu0  ;;  %v644_v54 = vadd.f32 %v2247_v30, %v643_v53 }
  0xb3   :  { %v479_v63 = vadd.f32 %v2247_v30, %v478_v61 }
  0xb4   :  { %v821_v57 = vmax.f32 %v644_v54, 0.0  ;;  %v69_v54 = vld [vmem:[%s3166_s0 + $0x128] sm:$0xff] }
  0xb5   :  { %v766_v1 = vmax.f32 %v479_v63, 0.0  ;;  %1870 = vmatmul.msk.f32.gmra.mxu0 %vm138_vm1, %v54_v62 }
  0xb6   :  { %1926 = vmatmul.msk.f32.gmra.mxu2 %vm138_vm1, %v110_v59  ;;  %2009 = vmatmul.msk.f32.gmra.mxu3 %vm868_vm2, %v821_v57  ;;  %v117_v57 = vld [vmem:[%s3166_s0 + $0x2a8] sm:$0xff] }
  0xb7   :  { %1954 = vmatmul.msk.f32.gmra.mxu1 %vm868_vm2, %v766_v1 }
  0xb9   :  { %v646_v61 = vpop.f32.mrf.mxu2 }
  0xba   :  { %v481_v2 = vpop.f32.mrf.mxu0  ;;  %v647_v62 = vadd.f32 %v2247_v30, %v646_v61 }
  0xbb   :  { %v482_v4 = vadd.f32 %v2247_v30, %v481_v2 }
  0xbc   :  { %v822_v1 = vmax.f32 %v647_v62, 0.0 }
  0xbd   :  { %v767_v6 = vmax.f32 %v482_v4, 0.0  ;;  %1871 = vmatmul.msk.f32.gmra.mxu0 %vm138_vm1, %v55_v3  ;;  %v111_v3 = vld [vmem:[%s3166_s0 + $0x278] sm:$0xff] }
  0xbe   :  { %1927 = vmatmul.msk.f32.gmra.mxu2 %vm138_vm1, %v111_v3  ;;  %2010 = vmatmul.msk.f32.gmra.mxu3 %vm868_vm2, %v822_v1 }
  0xbf   :  { %1955 = vmatmul.msk.f32.gmra.mxu1 %vm868_vm2, %v767_v6 }
  0xc1   :  { %v649_v5 = vpop.f32.mrf.mxu2 }
  0xc2   :  { %v484_v7 = vpop.f32.mrf.mxu0  ;;  %v650_v6 = vadd.f32 %v2247_v30, %v649_v5 }
  0xc3   :  { %v485_v9 = vadd.f32 %v2247_v30, %v484_v7 }
  0xc5   :  { %v768_v11 = vmax.f32 %v485_v9, 0.0  ;;  %1872 = vmatmul.msk.f32.gmra.mxu0 %vm138_vm1, %v56_v8  ;;  %v64_v8 = vld [vmem:[%s3166_s0 + $0x100] sm:$0xff]  ;;  %v823_v9 = vmax.f32 %v650_v6, 0.0 }
  0xc7   :  { %1956 = vmatmul.msk.f32.gmra.mxu1 %vm868_vm2, %v768_v11  ;;  %v112_v11 = vld [vmem:[%s3166_s0 + $0x280] sm:$0xff]  ;;  %2011 = vmatmul.msk.f32.gmra.mxu3 %vm868_vm2, %v823_v9 }
  0xc8   :  { %1928 = vmatmul.msk.f32.gmra.mxu2 %vm138_vm1, %v112_v11  ;;  %v119_v11 = vld [vmem:[%s3166_s0 + $0x2b8] sm:$0xff] }
  0xca   :  { %v487_v14 = vpop.f32.mrf.mxu0 }
  0xcb   :  { %v488_v17 = vadd.f32 %v2247_v30, %v487_v14  ;;  %v652_v14 = vpop.f32.mrf.mxu2 }
  0xcd   :  { %v769_v19 = vmax.f32 %v488_v17, 0.0  ;;  %1873 = vmatmul.msk.f32.gmra.mxu0 %vm138_vm1, %v57_v15  ;;  %v653_v15 = vadd.f32 %v2247_v30, %v652_v14  ;;  %v65_v17 = vld [vmem:[%s3166_s0 + $0x108] sm:$0xff] }
  0xcf   :  { %1957 = vmatmul.msk.f32.gmra.mxu1 %vm868_vm2, %v769_v19  ;;  %v824_v18 = vmax.f32 %v653_v15, 0.0 }
  0xd0   :  { %1929 = vmatmul.msk.f32.gmra.mxu2 %vm138_vm1, %v113_v20 }
  0xd1   :  { %2012 = vmatmul.msk.f32.gmra.mxu3 %vm868_vm2, %v824_v18  ;;  %v72_v18 = vld [vmem:[%s3166_s0 + $0x140] sm:$0xff] }
  0xd2   :  { %v490_v22 = vpop.f32.mrf.mxu0 }
  0xd3   :  { %v491_v25 = vadd.f32 %v2247_v30, %v490_v22 }
  0xd5   :  { %v770_v27 = vmax.f32 %v491_v25, 0.0  ;;  %1874 = vmatmul.msk.f32.gmra.mxu0 %vm138_vm1, %v58_v23  ;;  %v655_v23 = vpop.f32.mrf.mxu2 }
  0xd6   :  { %v656_v24 = vadd.f32 %v2247_v30, %v655_v23 }
  0xd7   :  { %1958 = vmatmul.msk.f32.gmra.mxu1 %vm868_vm2, %v770_v27 }
  0xd8   :  { %v825_v27 = vmax.f32 %v656_v24, 0.0  ;;  %1930 = vmatmul.msk.f32.gmra.mxu2 %vm138_vm1, %v114_v29 }
  0xda   :  { %v493_v31 = vpop.f32.mrf.mxu0  ;;  %2013 = vmatmul.msk.f32.gmra.mxu3 %vm868_vm2, %v825_v27 }
  0xdb   :  { %v494_v34 = vadd.f32 %v2247_v30, %v493_v31 }
  0xdd   :  { %v771_v36 = vmax.f32 %v494_v34, 0.0  ;;  %1875 = vmatmul.msk.f32.gmra.mxu0 %vm138_vm1, %v59_v32  ;;  %v658_v33 = vpop.f32.mrf.mxu2 }
  0xde   :  { %v659_v34 = vadd.f32 %v2247_v30, %v658_v33  ;;  %v121_v33 = vld [vmem:[%s3166_s0 + $0x2c8] sm:$0xff] }
  0xdf   :  { %1959 = vmatmul.msk.f32.gmra.mxu1 %vm868_vm2, %v771_v36  ;;  %v67_v36 = vld [vmem:[%s3166_s0 + $0x118] sm:$0xff] }
  0xe0   :  { %v826_v37 = vmax.f32 %v659_v34, 0.0 }
  0xe2   :  { %v496_v39 = vpop.f32.mrf.mxu0  ;;  %2014 = vmatmul.msk.f32.gmra.mxu3 %vm868_vm2, %v826_v37 }
  0xe3   :  { %v497_v42 = vadd.f32 %v2247_v30, %v496_v39  ;;  %v115_v39 = vld [vmem:[%s3166_s0 + $0x298] sm:$0xff] }
  0xe4   :  { %1931 = vmatmul.msk.f32.gmra.mxu2 %vm138_vm1, %v115_v39 }
  0xe5   :  { %v772_v44 = vmax.f32 %v497_v42, 0.0  ;;  %1876 = vmatmul.msk.f32.gmra.mxu0 %vm138_vm1, %v60_v40  ;;  %v661_v42 = vpop.f32.mrf.mxu2 }
  0xe6   :  { %v662_v43 = vadd.f32 %v2247_v30, %v661_v42 }
  0xe7   :  { %1960 = vmatmul.msk.f32.gmra.mxu1 %vm868_vm2, %v772_v44 }
  0xe8   :  { %v827_v46 = vmax.f32 %v662_v43, 0.0 }
  0xea   :  { %v499_v47 = vpop.f32.mrf.mxu0  ;;  %2015 = vmatmul.msk.f32.gmra.mxu3 %vm868_vm2, %v827_v46 }
  0xeb   :  { %v500_v50 = vadd.f32 %v2247_v30, %v499_v47 }
  0xed   :  { %v773_v52 = vmax.f32 %v500_v50, 0.0  ;;  %1877 = vmatmul.msk.f32.gmra.mxu0 %vm138_vm1, %v61_v48  ;;  %v116_v48 = vld [vmem:[%s3166_s0 + $0x2a0] sm:$0xff]  ;;  %v664_v51 = vpop.f32.mrf.mxu2 }
  0xee   :  { %1932 = vmatmul.msk.f32.gmra.mxu2 %vm138_vm1, %v116_v48 }
  0xef   :  { %1961 = vmatmul.msk.f32.gmra.mxu1 %vm868_vm2, %v773_v52  ;;  %v665_v52 = vadd.f32 %v2247_v30, %v664_v51 }
  0xf2   :  { %v502_v55 = vpop.f32.mrf.mxu0 }
  0xf3   :  { %v503_v58 = vadd.f32 %v2247_v30, %v502_v55  ;;  %v828_v55 = vmax.f32 %v665_v52, 0.0  ;;  %v75_v52 = vld [vmem:[%s3166_s0 + $0x158] sm:$0xff] }
  0xf5   :  { %v774_v60 = vmax.f32 %v503_v58, 0.0  ;;  %1878 = vmatmul.msk.f32.gmra.mxu0 %vm138_vm1, %v62_v56  ;;  %2016 = vmatmul.msk.f32.gmra.mxu3 %vm868_vm2, %v828_v55  ;;  %v123_v55 = vld [vmem:[%s3166_s0 + $0x2d8] sm:$0xff] }
  0xf6   :  { %1933 = vmatmul.msk.f32.gmra.mxu2 %vm138_vm1, %v117_v57 }
  0xf7   :  { %1962 = vmatmul.msk.f32.gmra.mxu1 %vm868_vm2, %v774_v60  ;;  %v667_v60 = vpop.f32.mrf.mxu2 }
  0xf8   :  { %v668_v61 = vadd.f32 %v2247_v30, %v667_v60 }
  0xfa   :  { %v505_v63 = vpop.f32.mrf.mxu0 }
  0xfb   :  { %v506_v2 = vadd.f32 %v2247_v30, %v505_v63  ;;  %v70_v63 = vld [vmem:[%s3166_s0 + $0x130] sm:$0xff] }
  0xfd   :  { %v775_v4 = vmax.f32 %v506_v2, 0.0  ;;  %1879 = vmatmul.msk.f32.gmra.mxu0 %vm138_vm1, %v63_v0  ;;  %v829_v0 = vmax.f32 %v668_v61, 0.0  ;;  %v118_v2 = vld [vmem:[%s3166_s0 + $0x2b0] sm:$0xff] }
  0xfe   :  { %1934 = vmatmul.msk.f32.gmra.mxu2 %vm138_vm1, %v118_v2  ;;  %v124_v2 = vld [vmem:[%s3166_s0 + $0x2e0] sm:$0xff] }
  0xff   :  { %1963 = vmatmul.msk.f32.gmra.mxu1 %vm868_vm2, %v775_v4  ;;  %2017 = vmatmul.msk.f32.gmra.mxu3 %vm868_vm2, %v829_v0  ;;  %v670_v5 = vpop.f32.mrf.mxu2 }
 0x100   :  { %v671_v6 = vadd.f32 %v2247_v30, %v670_v5 }
 0x102   :  { %v508_v7 = vpop.f32.mrf.mxu0  ;;  %v830_v9 = vmax.f32 %v671_v6, 0.0 }
 0x103   :  { %v509_v10 = vadd.f32 %v2247_v30, %v508_v7 }
 0x104   :  { %v2431_v12 = vpop.f32.mrf.mxu1 }
 0x105   :  { %v776_v13 = vmax.f32 %v509_v10, 0.0  ;;  %1880 = vmatmul.msk.f32.gmra.mxu0 %vm138_vm1, %v64_v8  ;;  %v71_v8 = vld [vmem:[%s3166_s0 + $0x138] sm:$0xff] }
 0x106   :  { %1935 = vmatmul.msk.f32.gmra.mxu2 %vm138_vm1, %v119_v11 }
 0x107   :  { %1964 = vmatmul.msk.f32.gmra.mxu1 %vm868_vm2, %v776_v13  ;;  %2018 = vmatmul.msk.f32.gmra.mxu3 %vm868_vm2, %v830_v9  ;;  %v673_v15 = vpop.f32.mrf.mxu2 }
 0x10a   :  { %v511_v16 = vpop.f32.mrf.mxu0 }
 0x10b   :  { %v512_v19 = vadd.f32 %v2247_v30, %v511_v16  ;;  %v674_v16 = vadd.f32 %v2247_v30, %v673_v15  ;;  %v125_v15 = vld [vmem:[%s3166_s0 + $0x2e8] sm:$0xff] }
 0x10c   :  { %v2445_v21 = vpop.f32.mrf.mxu1 }
 0x10d   :  { %v777_v22 = vmax.f32 %v512_v19, 0.0  ;;  %1881 = vmatmul.msk.f32.gmra.mxu0 %vm138_vm1, %v65_v17  ;;  %v831_v19 = vmax.f32 %v674_v16, 0.0 }
 0x10f   :  { %1965 = vmatmul.msk.f32.gmra.mxu1 %vm868_vm2, %v777_v22  ;;  %v120_v22 = vld [vmem:[%s3166_s0 + $0x2c0] sm:$0xff]  ;;  %2019 = vmatmul.msk.f32.gmra.mxu3 %vm868_vm2, %v831_v19 }
 0x110   :  { %1936 = vmatmul.msk.f32.gmra.mxu2 %vm138_vm1, %v120_v22 }
 0x111   :  { %v2563_v37 = vpop.f32.mrf.mxu3 }
 0x112   :  { %v514_v25 = vpop.f32.mrf.mxu0 }
 0x113   :  { %v515_v28 = vadd.f32 %v2247_v30, %v514_v25  ;;  %v676_v25 = vpop.f32.mrf.mxu2 }
 0x114   :  { %v2459_v31 = vpop.f32.mrf.mxu1 }
 0x115   :  { %v778_v32 = vmax.f32 %v515_v28, 0.0  ;;  %1882 = vmatmul.msk.f32.gmra.mxu0 %vm138_vm1, %v66_v26  ;;  %v677_v26 = vadd.f32 %v2247_v30, %v676_v25  ;;  %v73_v28 = vld [vmem:[%s3166_s0 + $0x148] sm:$0xff] }
 0x117   :  { %1966 = vmatmul.msk.f32.gmra.mxu1 %vm868_vm2, %v778_v32  ;;  %v832_v29 = vmax.f32 %v677_v26, 0.0 }
 0x118   :  { %1937 = vmatmul.msk.f32.gmra.mxu2 %vm138_vm1, %v121_v33 }
 0x119   :  { %2020 = vmatmul.msk.f32.gmra.mxu3 %vm868_vm2, %v832_v29  ;;  %v2579_v48 = vpop.f32.mrf.mxu3 }
 0x11a   :  { %v517_v35 = vpop.f32.mrf.mxu0 }
 0x11b   :  { %v518_v38 = vadd.f32 %v2247_v30, %v517_v35 }
 0x11c   :  { %v2473_v40 = vpop.f32.mrf.mxu1 }
 0x11d   :  { %v779_v41 = vmax.f32 %v518_v38, 0.0  ;;  %1883 = vmatmul.msk.f32.gmra.mxu0 %vm138_vm1, %v67_v36  ;;  %v679_v36 = vpop.f32.mrf.mxu2 }
 0x11e   :  { %v680_v38 = vadd.f32 %v2247_v30, %v679_v36 }
 0x11f   :  { %1967 = vmatmul.msk.f32.gmra.mxu1 %vm868_vm2, %v779_v41  ;;  %v74_v41 = vld [vmem:[%s3166_s0 + $0x150] sm:$0xff] }
 0x120   :  { %v833_v42 = vmax.f32 %v680_v38, 0.0  ;;  %v79_v38 = vld [vmem:[%s3166_s0 + $0x178] sm:$0xff] }
 0x121   :  { %v2595_v60 = vpop.f32.mrf.mxu3 }
 0x122   :  { %v520_v44 = vpop.f32.mrf.mxu0  ;;  %2021 = vmatmul.msk.f32.gmra.mxu3 %vm868_vm2, %v833_v42 }
 0x123   :  { %v521_v47 = vadd.f32 %v2247_v30, %v520_v44  ;;  %v122_v44 = vld [vmem:[%s3166_s0 + $0x2d0] sm:$0xff] }
 0x124   :  { %v2487_v49 = vpop.f32.mrf.mxu1  ;;  %1938 = vmatmul.msk.f32.gmra.mxu2 %vm138_vm1, %v122_v44 }
 0x125   :  { %v780_v50 = vmax.f32 %v521_v47, 0.0  ;;  %1884 = vmatmul.msk.f32.gmra.mxu0 %vm138_vm1, %v68_v45  ;;  %v682_v47 = vpop.f32.mrf.mxu2 }
 0x127   :  { %1968 = vmatmul.msk.f32.gmra.mxu1 %vm868_vm2, %v780_v50  ;;  %v683_v50 = vadd.f32 %v2247_v30, %v682_v47 }
 0x12a   :  { %v523_v53 = vpop.f32.mrf.mxu0 }
 0x12b   :  { %v524_v56 = vadd.f32 %v2247_v30, %v523_v53  ;;  %v834_v53 = vmax.f32 %v683_v50, 0.0 }
 0x12c   :  { %v2501_v58 = vpop.f32.mrf.mxu1  ;;  %1939 = vmatmul.msk.f32.gmra.mxu2 %vm138_vm1, %v123_v55 }
 0x12d   :  { %v781_v59 = vmax.f32 %v524_v56, 0.0  ;;  %1885 = vmatmul.msk.f32.gmra.mxu0 %vm138_vm1, %v69_v54  ;;  %2022 = vmatmul.msk.f32.gmra.mxu3 %vm868_vm2, %v834_v53 }
 0x12f   :  { %1969 = vmatmul.msk.f32.gmra.mxu1 %vm868_vm2, %v781_v59  ;;  %v685_v59 = vpop.f32.mrf.mxu2 }
 0x130   :  { %v686_v61 = vadd.f32 %v2247_v30, %v685_v59 }
 0x132   :  { %v526_v62 = vpop.f32.mrf.mxu0  ;;  %v835_v0 = vmax.f32 %v686_v61, 0.0 }
 0x133   :  { %v527_v1 = vadd.f32 %v2247_v30, %v526_v62 }
 0x134   :  { %v2515_v3 = vpop.f32.mrf.mxu1  ;;  %1940 = vmatmul.msk.f32.gmra.mxu2 %vm138_vm1, %v124_v2 }
 0x135   :  { %v782_v4 = vmax.f32 %v527_v1, 0.0  ;;  %1886 = vmatmul.msk.f32.gmra.mxu0 %vm138_vm1, %v70_v63  ;;  %v76_v63 = vld [vmem:[%s3166_s0 + $0x160] sm:$0xff]  ;;  %2023 = vmatmul.msk.f32.gmra.mxu3 %vm868_vm2, %v835_v0 }
 0x137   :  { %1970 = vmatmul.msk.f32.gmra.mxu1 %vm868_vm2, %v782_v4  ;;  %v688_v6 = vpop.f32.mrf.mxu2 }
 0x13a   :  { %v529_v7 = vpop.f32.mrf.mxu0 }
 0x13b   :  { %v530_v10 = vadd.f32 %v2247_v30, %v529_v7  ;;  %v2609_v7 = vpop.f32.mrf.mxu3 }
 0x13c   :  { %v2529_v13 = vpop.f32.mrf.mxu1  ;;  %1941 = vmatmul.msk.f32.gmra.mxu2 %vm138_vm1, %v125_v15 }
 0x13d   :  { %v783_v14 = vmax.f32 %v530_v10, 0.0  ;;  %1887 = vmatmul.msk.f32.gmra.mxu0 %vm138_vm1, %v71_v8  ;;  %v689_v8 = vadd.f32 %v2247_v30, %v688_v6  ;;  %v77_v10 = vld [vmem:[%s3166_s0 + $0x168] sm:$0xff] }
 0x13f   :  { %1971 = vmatmul.msk.f32.gmra.mxu1 %vm868_vm2, %v783_v14  ;;  %v836_v11 = vmax.f32 %v689_v8, 0.0 }
 0x141   :  { %2024 = vmatmul.msk.f32.gmra.mxu3 %vm868_vm2, %v836_v11 }
 0x142   :  { %v532_v17 = vpop.f32.mrf.mxu0 }
 0x143   :  { %v533_v20 = vadd.f32 %v2247_v30, %v532_v17  ;;  %v2623_v19 = vpop.f32.mrf.mxu3 }
 0x144   :  { %v2543_v23 = vpop.f32.mrf.mxu1 }
 0x145   :  { %v784_v24 = vmax.f32 %v533_v20, 0.0  ;;  %1888 = vmatmul.msk.f32.gmra.mxu0 %vm138_vm1, %v72_v18  ;;  %v691_v18 = vpop.f32.mrf.mxu2 }
 0x146   :  { %v692_v20 = vadd.f32 %v2247_v30, %v691_v18  ;;  %v81_v18 = vld [vmem:[%s3166_s0 + $0x188] sm:$0xff] }
 0x147   :  { %1972 = vmatmul.msk.f32.gmra.mxu1 %vm868_vm2, %v784_v24  ;;  %v78_v24 = vld [vmem:[%s3166_s0 + $0x170] sm:$0xff] }
 0x148   :  { %v837_v25 = vmax.f32 %v692_v20, 0.0 }
 0x14a   :  { %v535_v27 = vpop.f32.mrf.mxu0  ;;  %2025 = vmatmul.msk.f32.gmra.mxu3 %vm868_vm2, %v837_v25  ;;  %v129_v25 = vld [vmem:[%s3166_s0 + $0x308] sm:$0xff] }
 0x14b   :  { %v536_v32 = vadd.f32 %v2247_v30, %v535_v27  ;;  %v126_v27 = vld [vmem:[%s3166_s0 + $0x2f0] sm:$0xff]  ;;  %v2637_v33 = vpop.f32.mrf.mxu3 }
 0x14c   :  { %v2557_v34 = vpop.f32.mrf.mxu1  ;;  %1942 = vmatmul.msk.f32.gmra.mxu2 %vm138_vm1, %v126_v27 }
 0x14d   :  { %v785_v35 = vmax.f32 %v536_v32, 0.0  ;;  %1889 = vmatmul.msk.f32.gmra.mxu0 %vm138_vm1, %v73_v28  ;;  %v694_v32 = vpop.f32.mrf.mxu2 }
 0x14f   :  { %1973 = vmatmul.msk.f32.gmra.mxu1 %vm868_vm2, %v785_v35  ;;  %v695_v35 = vadd.f32 %v2247_v30, %v694_v32 }
 0x152   :  { %v538_v39 = vpop.f32.mrf.mxu0 }
 0x153   :  { %v539_v43 = vadd.f32 %v2247_v30, %v538_v39  ;;  %v838_v39 = vmax.f32 %v695_v35, 0.0 }
 0x154   :  { %v2573_v45 = vpop.f32.mrf.mxu1 }
 0x155   :  { %v786_v46 = vmax.f32 %v539_v43, 0.0  ;;  %1890 = vmatmul.msk.f32.gmra.mxu0 %vm138_vm1, %v74_v41  ;;  %v2646_v41 = vld [vmem:[%s3169_s4] ss:$0 sm:$0xff]  ;;  %v127_v43 = vld [vmem:[%s3166_s0 + $0x2f8] sm:$0xff]  ;;  %2026 = vmatmul.msk.f32.gmra.mxu3 %vm868_vm2, %v838_v39  ;;  %v697_v53 = vpop.f32.mrf.mxu2 }
 0x156   :  { %1943 = vmatmul.msk.f32.gmra.mxu2 %vm138_vm1, %v127_v43  ;;  %v698_v55 = vadd.f32 %v2247_v30, %v697_v53  ;;  %v1217_v6 = vadd.f32 %v2646_v41, %v2573_v45  ;;  %v1211_v45 = vadd.f32 %v2646_v41, %v2543_v23  ;;  %v1208_v20 = vadd.f32 %v2646_v41, %v2529_v13 }
 0x157   :  { %1974 = vmatmul.msk.f32.gmra.mxu1 %vm868_vm2, %v786_v46  ;;  %v1196_v43 = vadd.f32 %v2646_v41, %v2473_v40 }
 0x158   :  { %v1494_v13 = vmax.f32 %v1211_v45, 0.0 }
 0x159   :  { %v1489_v53 = vmax.f32 %v1196_v43, 0.0 }
 0x15a   :  { %v541_v51 = vpop.f32.mrf.mxu0 }
 0x15b   :  { %v542_v54 = vadd.f32 %v2247_v30, %v541_v51 }
 0x15c   :  { %v2589_v56 = vpop.f32.mrf.mxu1 }
 0x15d   :  { %v787_v57 = vmax.f32 %v542_v54, 0.0  ;;  %1891 = vmatmul.msk.f32.gmra.mxu0 %vm138_vm1, %v75_v52  ;;  %v2659_v54 = vpop.f32.mrf.mxu3  ;;  %v1220_v0 = vadd.f32 %v2646_v41, %v2589_v56  ;;  %v700_v11 = vpop.f32.mrf.mxu2 }
 0x15e   :  { %v701_v15 = vadd.f32 %v2247_v30, %v700_v11  ;;  %v84_v11 = vld [vmem:[%s3166_s0 + $0x1a0] sm:$0xff] }
 0x15f   :  { %1975 = vmatmul.msk.f32.gmra.mxu1 %vm868_vm2, %v787_v57 }
 0x162   :  { %v544_v62 = vpop.f32.mrf.mxu0 }
 0x163   :  { %v545_v1 = vadd.f32 %v2247_v30, %v544_v62  ;;  %v80_v62 = vld [vmem:[%s3166_s0 + $0x180] sm:$0xff] }
 0x164   :  { %v1222_v4 = vpop.f32.mrf.mxu1 }
 0x165   :  { %v788_v5 = vmax.f32 %v545_v1, 0.0  ;;  %1892 = vmatmul.msk.f32.gmra.mxu0 %vm138_vm1, %v76_v63  ;;  %v1223_v57 = vadd.f32 %v2646_v41, %v1222_v4  ;;  %v839_v63 = vmax.f32 %v698_v55, 0.0  ;;  %v703_v32 = vpop.f32.mrf.mxu2 }
 0x167   :  { %1976 = vmatmul.msk.f32.gmra.mxu1 %vm868_vm2, %v788_v5  ;;  %v128_v5 = vld [vmem:[%s3166_s0 + $0x300] sm:$0xff]  ;;  %2027 = vmatmul.msk.f32.gmra.mxu3 %vm868_vm2, %v839_v63  ;;  %v1498_v56 = vmax.f32 %v1223_v57, 0.0  ;;  %v83_v63 = vld [vmem:[%s3166_s0 + $0x198] sm:$0xff] }
 0x168   :  { %1944 = vmatmul.msk.f32.gmra.mxu2 %vm138_vm1, %v128_v5 }
 0x16a   :  { %v547_v9 = vpop.f32.mrf.mxu0 }
 0x16b   :  { %v548_v14 = vadd.f32 %v2247_v30, %v547_v9  ;;  %v1214_v9 = vadd.f32 %v2646_v41, %v2557_v34  ;;  %v840_v34 = vmax.f32 %v701_v15, 0.0 }
 0x16c   :  { %v1225_v16 = vpop.f32.mrf.mxu1 }
 0x16d   :  { %v789_v17 = vmax.f32 %v548_v14, 0.0  ;;  %1893 = vmatmul.msk.f32.gmra.mxu0 %vm138_vm1, %v77_v10  ;;  %v1226_v51 = vadd.f32 %v2646_v41, %v1225_v16  ;;  %v1497_v10 = vmax.f32 %v1220_v0, 0.0  ;;  %v2682_v14 = vpop.f32.mrf.mxu3  ;;  %v1496_v16 = vmax.f32 %v1217_v6, 0.0  ;;  %v706_v55 = vpop.f32.mrf.mxu2 }
 0x16f   :  { %1977 = vmatmul.msk.f32.gmra.mxu1 %vm868_vm2, %v789_v17  ;;  %v1499_v2 = vmax.f32 %v1226_v51, 0.0  ;;  %2028 = vmatmul.msk.f32.gmra.mxu3 %vm868_vm2, %v840_v34 }
 0x170   :  { %1945 = vmatmul.msk.f32.gmra.mxu2 %vm138_vm1, %v129_v25 }
 0x172   :  { %v550_v22 = vpop.f32.mrf.mxu0 }
 0x173   :  { %v551_v26 = vadd.f32 %v2247_v30, %v550_v22 }
 0x174   :  { %v1228_v28 = vpop.f32.mrf.mxu1 }
 0x175   :  { %v790_v29 = vmax.f32 %v551_v26, 0.0  ;;  %1894 = vmatmul.msk.f32.gmra.mxu0 %vm138_vm1, %v78_v24  ;;  %v1229_v46 = vadd.f32 %v2646_v41, %v1228_v28  ;;  %v1495_v24 = vmax.f32 %v1214_v9, 0.0  ;;  %v1205_v26 = vadd.f32 %v2646_v41, %v2515_v3  ;;  %v2706_v35 = vpop.f32.mrf.mxu3 }
 0x176   :  { %v1202_v28 = vadd.f32 %v2646_v41, %v2501_v58  ;;  %v1199_v3 = vadd.f32 %v2646_v41, %v2487_v49 }
 0x177   :  { %1978 = vmatmul.msk.f32.gmra.mxu1 %vm868_vm2, %v790_v29  ;;  %v1500_v59 = vmax.f32 %v1229_v46, 0.0  ;;  %v1493_v29 = vmax.f32 %v1208_v20, 0.0 }
 0x178   :  { %v1491_v46 = vmax.f32 %v1202_v28, 0.0  ;;  %v1490_v40 = vmax.f32 %v1199_v3, 0.0  ;;  %v86_v3 = vld [vmem:[%s3166_s0 + $0x1b0] sm:$0xff] }
 0x17a   :  { %v553_v36 = vpop.f32.mrf.mxu0 }
 0x17b   :  { %v554_v42 = vadd.f32 %v2247_v30, %v553_v36  ;;  %v704_v36 = vadd.f32 %v2247_v30, %v703_v32 }
 0x17c   :  { %v1231_v44 = vpop.f32.mrf.mxu1 }
 0x17d   :  { %v791_v47 = vmax.f32 %v554_v42, 0.0  ;;  %v1232_v50 = vadd.f32 %v2646_v41, %v1231_v44  ;;  %1895 = vmatmul.msk.f32.gmra.mxu0 %vm138_vm1, %v79_v38  ;;  %v1492_v38 = vmax.f32 %v1205_v26, 0.0  ;;  %v82_v42 = vld [vmem:[%s3166_s0 + $0x190] sm:$0xff]  ;;  %v841_v58 = vmax.f32 %v704_v36, 0.0  ;;  %v2730_v57 = vpop.f32.mrf.mxu3 }
 0x17f   :  { %1979 = vmatmul.msk.f32.gmra.mxu1 %vm868_vm2, %v791_v47  ;;  %v1501_v52 = vmax.f32 %v1232_v50, 0.0  ;;  %v130_v47 = vld [vmem:[%s3166_s0 + $0x310] sm:$0xff]  ;;  %2029 = vmatmul.msk.f32.gmra.mxu3 %vm868_vm2, %v841_v58  ;;  %v1193_v50 = vadd.f32 %v2646_v41, %v2459_v31  ;;  %v1187_v31 = vadd.f32 %v2646_v41, %v2431_v12 }
 0x180   :  { %1946 = vmatmul.msk.f32.gmra.mxu2 %vm138_vm1, %v130_v47 }
 0x181   :  { %1636 = vmatpush.msrb.mxu2 %v1501_v52  ;;  %v1190_v52 = vadd.f32 %v2646_v41, %v2445_v21  ;;  %v1486_v6 = vmax.f32 %v1187_v31, 0.0 }
 0x182   :  { %v556_v61 = vpop.f32.mrf.mxu0 }
 0x183   :  { %v557_v1 = vadd.f32 %v2247_v30, %v556_v61  ;;  %1637 = vmatpush.msrb.mxu2 %v1500_v59  ;;  %v707_v59 = vadd.f32 %v2247_v30, %v706_v55  ;;  %v1488_v61 = vmax.f32 %v1193_v50, 0.0  ;;  %v87_v50 = vld [vmem:[%s3166_s0 + $0x1b8] sm:$0xff] }
 0x184   :  { %v2672_v4 = vpop.f32.mrf.mxu1 }
 0x185   :  { %v792_v8 = vmax.f32 %v557_v1, 0.0  ;;  %1896 = vmatmul.msk.f32.gmra.mxu0 %vm138_vm1, %v80_v62  ;;  %1638 = vmatpush.msrb.mxu2 %v1499_v2  ;;  %v842_v21 = vmax.f32 %v707_v59, 0.0  ;;  %v1487_v1 = vmax.f32 %v1190_v52, 0.0  ;;  %v131_v2 = vld [vmem:[%s3166_s0 + $0x318] sm:$0xff] }
 0x187   :  { %1980 = vmatmul.msk.f32.gmra.mxu1 %vm868_vm2, %v792_v8  ;;  %1639 = vmatpush.msrb.mxu2 %v1498_v56  ;;  %v709_v8 = vpop.f32.mrf.mxu2  ;;  %v2748_v56 = vpop.f32.mrf.mxu3 }
 0x188   :  { %2030 = vmatmul.msk.f32.gmra.mxu3 %vm868_vm2, %v842_v21  ;;  %1947 = vmatmul.msk.f32.gmra.mxu2 %vm138_vm1, %v131_v2  ;;  %v710_v9 = vadd.f32 %v2247_v30, %v709_v8 }
 0x189   :  { %1640 = vmatpush.msrb.mxu2 %v1497_v10 }
 0x18a   :  { %v559_v17 = vpop.f32.mrf.mxu0  ;;  %v843_v15 = vmax.f32 %v710_v9, 0.0 }
 0x18b   :  { %v560_v22 = vadd.f32 %v2247_v30, %v559_v17  ;;  %1641 = vmatpush.msrb.mxu2 %v1496_v16 }
 0x18c   :  { %v2696_v23 = vpop.f32.mrf.mxu1 }
 0x18d   :  { %v793_v27 = vmax.f32 %v560_v22, 0.0  ;;  %1897 = vmatmul.msk.f32.gmra.mxu0 %vm138_vm1, %v81_v18  ;;  %1642 = vmatpush.msrb.mxu2 %v1495_v24  ;;  %v85_v24 = vld [vmem:[%s3166_s0 + $0x1a8] sm:$0xff] }
 0x18f   :  { %1981 = vmatmul.msk.f32.gmra.mxu1 %vm868_vm2, %v793_v27  ;;  %1643 = vmatpush.msrb.mxu2 %v1494_v13  ;;  %v712_v18 = vpop.f32.mrf.mxu2  ;;  %v2760_v34 = vpop.f32.mrf.mxu3 }
 0x190   :  { %2031 = vmatmul.msk.f32.gmra.mxu3 %vm868_vm2, %v843_v15  ;;  %v713_v20 = vadd.f32 %v2247_v30, %v712_v18 }
 0x191   :  { %1644 = vmatpush.msrb.mxu2 %v1493_v29 }
 0x192   :  { %v562_v39 = vpop.f32.mrf.mxu0  ;;  %v844_v25 = vmax.f32 %v713_v20, 0.0 }
 0x193   :  { %v563_v44 = vadd.f32 %v2247_v30, %v562_v39  ;;  %1645 = vmatpush.msrb.mxu2 %v1492_v38 }
 0x194   :  { %v2720_v49 = vpop.f32.mrf.mxu1 }
 0x195   :  { %v794_v51 = vmax.f32 %v563_v44, 0.0  ;;  %1898 = vmatmul.msk.f32.gmra.mxu0 %vm138_vm1, %v82_v42  ;;  %1646 = vmatpush.msrb.mxu2 %v1491_v46  ;;  %v2789_v46 = vld [vmem:[%s3167_s2] ss:$0 sm:$0xff] }
 0x197   :  { %1982 = vmatmul.msk.f32.gmra.mxu1 %vm868_vm2, %v794_v51  ;;  %1647 = vmatpush.msrb.mxu2 %v1490_v40  ;;  %v715_v28 = vpop.f32.mrf.mxu2  ;;  %v2772_v29 = vpop.f32.mrf.mxu3 }
 0x198   :  { %2032 = vmatmul.msk.f32.gmra.mxu3 %vm868_vm2, %v844_v25  ;;  %v716_v32 = vadd.f32 %v2247_v30, %v715_v28 }
 0x199   :  { %1648 = vmatpush.msrb.mxu2 %v1489_v53 }
 0x19a   :  { %v565_v62 = vpop.f32.mrf.mxu0  ;;  %v845_v38 = vmax.f32 %v716_v32, 0.0 }
 0x19b   :  { %v566_v0 = vadd.f32 %v2247_v30, %v565_v62  ;;  %1649 = vmatpush.msrb.mxu2 %v1488_v61 }
 0x19c   :  { %v2742_v5 = vpop.f32.mrf.mxu1 }
 0x19d   :  { %v795_v12 = vmax.f32 %v566_v0, 0.0  ;;  %1899 = vmatmul.msk.f32.gmra.mxu0 %vm138_vm1, %v83_v63  ;;  %1650 = vmatpush.msrb.mxu2 %v1487_v1 }
 0x19f   :  { %1983 = vmatmul.msk.f32.gmra.mxu1 %vm868_vm2, %v795_v12  ;;  %1651 = vmatpush.msrb.mxu2 %v1486_v6  ;;  %v718_v43 = vpop.f32.mrf.mxu2  ;;  %v2784_v44 = vpop.f32.mrf.mxu3 }
 0x1a0   :  { %2033 = vmatmul.msk.f32.gmra.mxu3 %vm868_vm2, %v845_v38  ;;  %v719_v47 = vadd.f32 %v2789_v46, %v718_v43 }
 0x1a2   :  { %v568_v10 = vpop.f32.mrf.mxu0  ;;  %v846_v51 = vmax.f32 %v719_v47, 0.0 }
 0x1a3   :  { %v569_v45 = vadd.f32 %v2247_v30, %v568_v10 }
 0x1a4   :  { %v2755_v16 = vpop.f32.mrf.mxu1 }
 0x1a5   :  { %v796_v17 = vmax.f32 %v569_v45, 0.0  ;;  %1900 = vmatmul.msk.f32.gmra.mxu0 %vm138_vm1, %v84_v11 }
 0x1a7   :  { %1984 = vmatmul.msk.f32.gmra.mxu1 %vm868_vm2, %v796_v17  ;;  %v721_v55 = vpop.f32.mrf.mxu2  ;;  %v2801_v59 = vpop.f32.mrf.mxu3 }
 0x1a8   :  { %2034 = vmatmul.msk.f32.gmra.mxu3 %vm868_vm2, %v846_v51  ;;  %v722_v31 = vadd.f32 %v2789_v46, %v721_v55 }
 0x1aa   :  { %v571_v22 = vpop.f32.mrf.mxu0  ;;  %v847_v62 = vmax.f32 %v722_v31, 0.0 }
 0x1ab   :  { %v572_v26 = vadd.f32 %v2247_v30, %v571_v22 }
 0x1ac   :  { %v2767_v27 = vpop.f32.mrf.mxu1 }
 0x1ad   :  { %v797_v13 = vmax.f32 %v572_v26, 0.0  ;;  %1901 = vmatmul.msk.f32.gmra.mxu0 %vm138_vm1, %v85_v24 }
 0x1af   :  { %1985 = vmatmul.msk.f32.gmra.mxu1 %vm868_vm2, %v797_v13  ;;  %v724_v1 = vpop.f32.mrf.mxu2  ;;  %v2809_v2 = vpop.f32.mrf.mxu3 }
 0x1b0   :  { %2035 = vmatmul.msk.f32.gmra.mxu3 %vm868_vm2, %v847_v62  ;;  %v725_v12 = vadd.f32 %v2789_v46, %v724_v1 }
 0x1b2   :  { %v574_v36 = vpop.f32.mrf.mxu0  ;;  %v848_v8 = vmax.f32 %v725_v12, 0.0 }
 0x1b3   :  { %v575_v39 = vadd.f32 %v2247_v30, %v574_v36 }
 0x1b4   :  { %v2779_v42 = vpop.f32.mrf.mxu1 }
 0x1b5   :  { %v798_v58 = vmax.f32 %v575_v39, 0.0  ;;  %1902 = vmatmul.msk.f32.gmra.mxu0 %vm138_vm1, %v86_v3 }
 0x1b7   :  { %1986 = vmatmul.msk.f32.gmra.mxu1 %vm868_vm2, %v798_v58  ;;  %v727_v15 = vpop.f32.mrf.mxu2  ;;  %v2817_v45 = vpop.f32.mrf.mxu3 }
 0x1b8   :  { %2036 = vmatmul.msk.f32.gmra.mxu3 %vm868_vm2, %v848_v8  ;;  %v728_v17 = vadd.f32 %v2789_v46, %v727_v15 }
 0x1ba   :  { %v577_v30 = vpop.f32.mrf.mxu0  ;;  %v849_v20 = vmax.f32 %v728_v17, 0.0 }
 0x1bb   :  { %v578_v40 = vadd.f32 %v2789_v46, %v577_v30 }
 0x1bc   :  { %v2796_v52 = vpop.f32.mrf.mxu1 }
 0x1bd   :  { %v799_v53 = vmax.f32 %v578_v40, 0.0  ;;  %1903 = vmatmul.msk.f32.gmra.mxu0 %vm138_vm1, %v87_v50 }
 0x1bf   :  { %1987 = vmatmul.msk.f32.gmra.mxu1 %vm868_vm2, %v799_v53  ;;  %v730_v26 = vpop.f32.mrf.mxu2  ;;  %v2825_v13 = vpop.f32.mrf.mxu3 }
 0x1c0   :  { %2037 = vmatmul.msk.f32.gmra.mxu3 %vm868_vm2, %v849_v20  ;;  %v731_v28 = vadd.f32 %v2789_v46, %v730_v26 }
 0x1c2   :  { %v580_v61 = vpop.f32.mrf.mxu0  ;;  %v850_v36 = vmax.f32 %v731_v28, 0.0 }
 0x1c3   :  { %v581_v63 = vadd.f32 %v2789_v46, %v580_v61 }
 0x1c4   :  { %v2805_v21 = vpop.f32.mrf.mxu1 }
 0x1c5   :  { %v800_v0 = vmax.f32 %v581_v63, 0.0 }
 0x1c7   :  { %1988 = vmatmul.msk.f32.gmra.mxu1 %vm868_vm2, %v800_v0  ;;  %v733_v58 = vpop.f32.mrf.mxu2  ;;  %v2831_v43 = vpop.f32.mrf.mxu3 }
 0x1c8   :  { %2038 = vmatmul.msk.f32.gmra.mxu3 %vm868_vm2, %v850_v36  ;;  %v734_v47 = vadd.f32 %v2789_v46, %v733_v58 }
 0x1ca   :  { %v583_v6 = vpop.f32.mrf.mxu0  ;;  %v851_v50 = vmax.f32 %v734_v47, 0.0 }
 0x1cb   :  { %v584_v9 = vadd.f32 %v2789_v46, %v583_v6 }
 0x1cc   :  { %v2813_v10 = vpop.f32.mrf.mxu1 }
 0x1cd   :  { %v801_v11 = vmax.f32 %v584_v9, 0.0 }
 0x1cf   :  { %1989 = vmatmul.msk.f32.gmra.mxu1 %vm868_vm2, %v801_v11  ;;  %v736_v55 = vpop.f32.mrf.mxu2  ;;  %v2837_v31 = vpop.f32.mrf.mxu3 }
 0x1d0   :  { %2039 = vmatmul.msk.f32.gmra.mxu3 %vm868_vm2, %v851_v50  ;;  %v737_v61 = vadd.f32 %v2789_v46, %v736_v55 }
 0x1d2   :  { %v586_v18 = vpop.f32.mrf.mxu0  ;;  %v852_v63 = vmax.f32 %v737_v61, 0.0 }
 0x1d3   :  { %v587_v22 = vadd.f32 %v2789_v46, %v586_v18 }
 0x1d4   :  { %v2821_v24 = vpop.f32.mrf.mxu1 }
 0x1d5   :  { %v802_v25 = vmax.f32 %v587_v22, 0.0 }
 0x1d7   :  { %1990 = vmatmul.msk.f32.gmra.mxu1 %vm868_vm2, %v802_v25  ;;  %v739_v6 = vpop.f32.mrf.mxu2  ;;  %v2843_v8 = vpop.f32.mrf.mxu3 }
 0x1d8   :  { %2040 = vmatmul.msk.f32.gmra.mxu3 %vm868_vm2, %v852_v63  ;;  %v740_v9 = vadd.f32 %v2789_v46, %v739_v6 }
 0x1da   :  { %v589_v32 = vpop.f32.mrf.mxu0  ;;  %v853_v15 = vmax.f32 %v740_v9, 0.0 }
 0x1db   :  { %v590_v3 = vadd.f32 %v2789_v46, %v589_v32 }
 0x1dc   :  { %v1267_v38 = vpop.f32.mrf.mxu1 }
 0x1dd   :  { %v803_v39 = vmax.f32 %v590_v3, 0.0 }
 0x1df   :  { %1991 = vmatmul.msk.f32.gmra.mxu1 %vm868_vm2, %v803_v39  ;;  %v742_v22 = vpop.f32.mrf.mxu2  ;;  %v2849_v25 = vpop.f32.mrf.mxu3 }
 0x1e0   :  { %2041 = vmatmul.msk.f32.gmra.mxu3 %vm868_vm2, %v853_v15  ;;  %v743_v26 = vadd.f32 %v2789_v46, %v742_v22 }
 0x1e2   :  { %v592_v30 = vpop.f32.mrf.mxu0  ;;  %v854_v32 = vmax.f32 %v743_v26, 0.0  ;;  %v1259_v26 = vadd.f32 %v2646_v41, %v2805_v21 }
 0x1e3   :  { %v593_v51 = vadd.f32 %v2789_v46, %v592_v30 }
 0x1e4   :  { %v1270_v40 = vpop.f32.mrf.mxu1  ;;  %v1510_v21 = vmax.f32 %v1259_v26, 0.0 }
 0x1e5   :  { %v804_v53 = vmax.f32 %v593_v51, 0.0  ;;  %v1271_v61 = vadd.f32 %v2646_v41, %v1270_v40 }
 0x1e7   :  { %1992 = vmatmul.msk.f32.gmra.mxu1 %vm868_vm2, %v804_v53  ;;  %v745_v51 = vpop.f32.mrf.mxu2  ;;  %v2858_v53 = vpop.f32.mrf.mxu3  ;;  %v1514_v40 = vmax.f32 %v1271_v61, 0.0  ;;  %v1247_v61 = vadd.f32 %v2646_v41, %v2755_v16 }
 0x1e8   :  { %2042 = vmatmul.msk.f32.gmra.mxu3 %vm868_vm2, %v854_v32  ;;  %v746_v55 = vadd.f32 %v2789_v46, %v745_v51 }
 0x1e9   :  { %v1506_v16 = vmax.f32 %v1247_v61, 0.0 }
 0x1ea   :  { %v595_v62 = vpop.f32.mrf.mxu0 }
 0x1eb   :  { %v596_v0 = vadd.f32 %v2789_v46, %v595_v62 }
 0x1ec   :  { %v1273_v1 = vpop.f32.mrf.mxu1 }
 0x1ed   :  { %v805_v12 = vmax.f32 %v596_v0, 0.0  ;;  %v1274_v30 = vadd.f32 %v2646_v41, %v1273_v1  ;;  %v855_v0 = vmax.f32 %v746_v55, 0.0 }
 0x1ef   :  { %1993 = vmatmul.msk.f32.gmra.mxu1 %vm868_vm2, %v805_v12  ;;  %v1268_v12 = vadd.f32 %v2646_v41, %v1267_v38  ;;  %v1515_v1 = vmax.f32 %v1274_v30, 0.0  ;;  %v1250_v30 = vadd.f32 %v2646_v41, %v2767_v27 }
 0x1f0   :  { %2043 = vmatmul.msk.f32.gmra.mxu3 %vm868_vm2, %v855_v0  ;;  %v1244_v0 = vadd.f32 %v2646_v41, %v2742_v5 }
 0x1f1   :  { %v1513_v38 = vmax.f32 %v1268_v12, 0.0  ;;  %v1507_v12 = vmax.f32 %v1250_v30, 0.0 }
 0x1f2   :  { %v598_v11 = vpop.f32.mrf.mxu0  ;;  %v1505_v5 = vmax.f32 %v1244_v0, 0.0  ;;  %v1358_v0 = vadd.f32 %v2646_v41, %v2579_v48 }
 0x1f3   :  { %v599_v17 = vadd.f32 %v2789_v46, %v598_v11  ;;  %v1265_v11 = vadd.f32 %v2646_v41, %v2821_v24 }
 0x1f4   :  { %v1276_v18 = vpop.f32.mrf.mxu1 }
 0x1f5   :  { %v806_v20 = vmax.f32 %v599_v17, 0.0  ;;  %v1277_v39 = vadd.f32 %v2646_v41, %v1276_v18  ;;  %v1262_v17 = vadd.f32 %v2646_v41, %v2813_v10  ;;  %v2872_v18 = vpop.f32.mrf.mxu3  ;;  %v1512_v24 = vmax.f32 %v1265_v11, 0.0 }
 0x1f7   :  { %1994 = vmatmul.msk.f32.gmra.mxu1 %vm868_vm2, %v806_v20  ;;  %v1516_v62 = vmax.f32 %v1277_v39, 0.0  ;;  %v748_v20 = vpop.f32.mrf.mxu2 }
 0x1f8   :  { %v749_v22 = vadd.f32 %v2789_v46, %v748_v20  ;;  %v1235_v20 = vadd.f32 %v2646_v41, %v2672_v4 }
 0x1fa   :  { %v601_v28 = vpop.f32.mrf.mxu0  ;;  %v856_v32 = vmax.f32 %v749_v22, 0.0  ;;  %v1376_v22 = vadd.f32 %v2646_v41, %v2682_v14  ;;  %v1502_v4 = vmax.f32 %v1235_v20, 0.0 }
 0x1fb   :  { %v602_v36 = vadd.f32 %v2789_v46, %v601_v28 }
 0x1fc   :  { %v1279_v3 = vpop.f32.mrf.mxu1  ;;  %2044 = vmatmul.msk.f32.gmra.mxu3 %vm868_vm2, %v856_v32  ;;  %v1373_v32 = vadd.f32 %v2646_v41, %v2659_v54  ;;  %v1549_v14 = vmax.f32 %v1376_v22, 0.0  ;;  %v1367_v54 = vadd.f32 %v2646_v41, %v2623_v19 }
 0x1fd   :  { %v807_v58 = vmax.f32 %v602_v36, 0.0  ;;  %v1280_v47 = vadd.f32 %v2646_v41, %v1279_v3  ;;  %v1256_v36 = vadd.f32 %v2646_v41, %v2796_v52  ;;  %v1511_v3 = vmax.f32 %v1262_v17, 0.0 }
 0x1ff   :  { %1995 = vmatmul.msk.f32.gmra.mxu1 %vm868_vm2, %v807_v58  ;;  %v1517_v50 = vmax.f32 %v1280_v47, 0.0  ;;  %v1253_v58 = vadd.f32 %v2646_v41, %v2779_v42  ;;  %v1509_v52 = vmax.f32 %v1256_v36, 0.0  ;;  %v751_v51 = vpop.f32.mrf.mxu2 }
 0x200   :  { %v752_v55 = vadd.f32 %v2789_v46, %v751_v51 }
 0x201   :  { %1656 = vmatpush.msrb.mxu3 %v1517_v50  ;;  %v2888_v50 = vpop.f32.mrf.mxu3  ;;  %v1508_v42 = vmax.f32 %v1253_v58, 0.0 }
 0x202   :  { %v604_v63 = vpop.f32.mrf.mxu0 }
 0x203   :  { %v605_v6 = vadd.f32 %v2789_v46, %v604_v63  ;;  %1657 = vmatpush.msrb.mxu3 %v1516_v62  ;;  %v857_v63 = vmax.f32 %v752_v55, 0.0 }
 0x204   :  { %v2864_v9 = vpop.f32.mrf.mxu1 }
 0x205   :  { %v808_v15 = vmax.f32 %v605_v6, 0.0  ;;  %1658 = vmatpush.msrb.mxu3 %v1515_v1  ;;  %v1241_v1 = vadd.f32 %v2646_v41, %v2720_v49 }
 0x206   :  { %2045 = vmatmul.msk.f32.gmra.mxu3 %vm868_vm2, %v857_v63 }
 0x207   :  { %1996 = vmatmul.msk.f32.gmra.mxu1 %vm868_vm2, %v808_v15  ;;  %1659 = vmatpush.msrb.mxu3 %v1514_v40  ;;  %v1238_v15 = vadd.f32 %v2646_v41, %v2696_v23  ;;  %v754_v17 = vpop.f32.mrf.mxu2  ;;  %v1504_v49 = vmax.f32 %v1241_v1, 0.0  ;;  %v1543_v1 = vmax.f32 %v1358_v0, 0.0 }
 0x209   :  { %1660 = vmatpush.msrb.mxu3 %v1513_v38  ;;  %v2904_v40 = vpop.f32.mrf.mxu3  ;;  %v755_v38 = vadd.f32 %v2789_v46, %v754_v17 }
 0x20a   :  { %v607_v28 = vpop.f32.mrf.mxu0 }
 0x20b   :  { %v608_v10 = vadd.f32 %v2789_v46, %v607_v28  ;;  %1661 = vmatpush.msrb.mxu3 %v1512_v24  ;;  %v858_v24 = vmax.f32 %v755_v38, 0.0  ;;  %v1503_v28 = vmax.f32 %v1238_v15, 0.0 }
 0x20c   :  { %v2880_v39 = vpop.f32.mrf.mxu1 }
 0x20d   :  { %v809_v47 = vmax.f32 %v608_v10, 0.0  ;;  %1662 = vmatpush.msrb.mxu3 %v1511_v3  ;;  %v1370_v3 = vadd.f32 %v2646_v41, %v2637_v33 }
 0x20e   :  { %2046 = vmatmul.msk.f32.gmra.mxu3 %vm868_vm2, %v858_v24 }
 0x20f   :  { %1997 = vmatmul.msk.f32.gmra.mxu1 %vm868_vm2, %v809_v47  ;;  %1663 = vmatpush.msrb.mxu3 %v1510_v21  ;;  %v757_v47 = vpop.f32.mrf.mxu2  ;;  %v1548_v21 = vmax.f32 %v1373_v32, 0.0  ;;  %v1547_v51 = vmax.f32 %v1370_v3, 0.0 }
 0x210   :  { %v758_v30 = vadd.f32 %v2789_v46, %v757_v47 }
 0x211   :  { %1664 = vmatpush.msrb.mxu3 %v1509_v52  ;;  %v2920_v58 = vpop.f32.mrf.mxu3  ;;  %v1364_v52 = vadd.f32 %v2646_v41, %v2609_v7 }
 0x212   :  { %v610_v62 = vpop.f32.mrf.mxu0  ;;  %v859_v33 = vmax.f32 %v758_v30, 0.0 }
 0x213   :  { %v611_v27 = vadd.f32 %v2789_v46, %v610_v62  ;;  %1665 = vmatpush.msrb.mxu3 %v1508_v42  ;;  %v1361_v42 = vadd.f32 %v2646_v41, %v2595_v60  ;;  %v1546_v62 = vmax.f32 %v1367_v54, 0.0  ;;  %v1545_v7 = vmax.f32 %v1364_v52, 0.0 }
 0x214   :  { %v2896_v6 = vpop.f32.mrf.mxu1 }
 0x215   :  { %v810_v11 = vmax.f32 %v611_v27, 0.0  ;;  %1666 = vmatpush.msrb.mxu3 %v1507_v12  ;;  %v1355_v12 = vadd.f32 %v2646_v41, %v2563_v37  ;;  %v1544_v60 = vmax.f32 %v1361_v42, 0.0 }
 0x216   :  { %2047 = vmatmul.msk.f32.gmra.mxu3 %vm868_vm2, %v859_v33 }
 0x217   :  { %1998 = vmatmul.msk.f32.gmra.mxu1 %vm868_vm2, %v810_v11  ;;  %1667 = vmatpush.msrb.mxu3 %v1506_v16  ;;  %v1542_v15 = vmax.f32 %v1355_v12, 0.0 }
 0x219   :  { %1668 = vmatpush.msrb.mxu3 %v1505_v5  ;;  %v2936_v27 = vpop.f32.mrf.mxu3 }
 0x21a   :  { %v613_v26 = vpop.f32.mrf.mxu0 }
 0x21b   :  { %v614_v23 = vadd.f32 %v2789_v46, %v613_v26  ;;  %1669 = vmatpush.msrb.mxu3 %v1504_v49 }
 0x21c   :  { %v2914_v36 = vpop.f32.mrf.mxu1 }
 0x21d   :  { %v811_v10 = vmax.f32 %v614_v23, 0.0  ;;  %1670 = vmatpush.msrb.mxu3 %v1503_v28 }
 0x21f   :  { %1999 = vmatmul.msk.f32.gmra.mxu1 %vm868_vm2, %v811_v10  ;;  %1671 = vmatpush.msrb.mxu3 %v1502_v4 }
 0x221   :  { %1696 = vmatpush.msra.mxu3 %v1549_v14  ;;  %v2944_v17 = vpop.f32.mrf.mxu3 }
 0x222   :  { %v616_v55 = vpop.f32.mrf.mxu0 }
 0x223   :  { %1697 = vmatpush.msra.mxu3 %v1548_v21  ;;  %v617_v61 = vadd.f32 %v2789_v46, %v616_v55 }
 0x224   :  { %v2930_v63 = vpop.f32.mrf.mxu1 }
 0x225   :  { %1698 = vmatpush.msra.mxu3 %v1547_v51  ;;  %v812_v19 = vmax.f32 %v617_v61, 0.0  ;;  %v1586_v61 = vlaneseq }
 0x227   :  { %1699 = vmatpush.msra.mxu3 %v1546_v62  ;;  %2000 = vmatmul.msk.f32.gmra.mxu1 %vm868_vm2, %v812_v19  ;;  %v1595_v42 = vshrl.u32 %v1586_v61, 7 }
 0x229   :  { %1700 = vmatpush.msra.mxu3 %v1545_v7  ;;  %v2948_v22 = vpop.f32.mrf.mxu3  ;;  %v2968_v19 = vmul.u32 100, %v1595_v42  ;;  %v2970_v7 = vand.u32 127, %v1586_v61 }
 0x22a   :  { %v619_v11 = vpop.f32.mrf.mxu0 }
 0x22b   :  { %1701 = vmatpush.msra.mxu3 %v1544_v60  ;;  %v620_v16 = vadd.f32 %v2789_v46, %v619_v11  ;;  %v2973_v12 = vadd.s32 100, %v2968_v19  ;;  %vm1597_vm3 = vcmp.ge.s32.totalorder %v2970_v7, %v2968_v19 }
 0x22c   :  { %v2941_v5 = vpop.f32.mrf.mxu1 }
 0x22d   :  { %1702 = vmatpush.msra.mxu3 %v1543_v1  ;;  %v813_v48 = vmax.f32 %v620_v16, 0.0  ;;  %vm1605_vm4 = vcmp.lt.s32.totalorder %v2970_v7, %v2973_v12 }
 0x22e   :  { %vm1612_vm5 = vmand %vm1597_vm3, %vm1605_vm4 }
 0x22f   :  { %1703 = vmatpush.msra.mxu3 %v1542_v15  ;;  %2001 = vmatmul.msk.f32.gmra.mxu1 %vm868_vm2, %v813_v48  ;;  %v2078_v15 = vmov 1.0  }
 0x230   :  { %2055 = vmatmul.msk.f32.vlgmr.msrb.gmra.mxu2 %vm1612_vm5, %v2078_v15 }
 0x231   :  { %v2952_v32 = vpop.f32.mrf.mxu3 }
 0x232   :  { %v622_v38 = vpop.f32.mrf.mxu0 }
 0x233   :  { %v623_v37 = vadd.f32 %v2789_v46, %v622_v38 }
 0x234   :  { %v1300_v20 = vpop.f32.mrf.mxu1 }
 0x235   :  { %v814_v49 = vmax.f32 %v623_v37, 0.0 }
 0x237   :  { %2002 = vmatmul.msk.f32.gmra.mxu1 %vm868_vm2, %v814_v49 }
 0x239   :  { %v2954_v4 = vpop.f32.mrf.mxu3 }
 0x23a   :  { %v625_v26 = vpop.f32.mrf.mxu0 }
 0x23b   :  { %v626_v24 = vadd.f32 %v2789_v46, %v625_v26 }
 0x23c   :  { %v1303_v23 = vpop.f32.mrf.mxu1 }
 0x23d   :  { %v815_v28 = vmax.f32 %v626_v24, 0.0 }
 0x23f   :  { %2003 = vmatmul.msk.f32.gmra.mxu1 %vm868_vm2, %v815_v28 }
 0x241   :  { %v2956_v14 = vpop.f32.mrf.mxu3 }
 0x244   :  { %v1306_v10 = vpop.f32.mrf.mxu1 }
 0x249   :  { %v2958_v54 = vpop.f32.mrf.mxu3 }
 0x24c   :  { %v1309_v3 = vpop.f32.mrf.mxu1 }
 0x251   :  { %v2960_v30 = vpop.f32.mrf.mxu3 }
 0x254   :  { %v1312_v47 = vpop.f32.mrf.mxu1 }
 0x255   :  { %v1313_v28 = vadd.f32 %v2646_v41, %v1312_v47  ;;  %v1301_v47 = vadd.f32 %v2646_v41, %v1300_v20  ;;  %v1289_v20 = vadd.f32 %v2646_v41, %v2896_v6  ;;  %v1421_v6 = vadd.f32 %v2646_v41, %v2858_v53 }
 0x256   :  { %v1409_v53 = vadd.f32 %v2646_v41, %v2831_v43  ;;  %v1403_v43 = vadd.f32 %v2646_v41, %v2817_v45  ;;  %v1397_v45 = vadd.f32 %v2646_v41, %v2801_v59  ;;  %v1385_v59 = vadd.f32 %v2646_v41, %v2748_v56 }
 0x257   :  { %v1528_v42 = vmax.f32 %v1313_v28, 0.0  ;;  %v1286_v28 = vadd.f32 %v2646_v41, %v2880_v39  ;;  %v1418_v39 = vadd.f32 %v2646_v41, %v2849_v25  ;;  %v1588_v25 = vadd.s32 128, %v2970_v7 }
 0x258   :  { %v1552_v56 = vmax.f32 %v1385_v59, 0.0 }
 0x259   :  { %v2962_v46 = vpop.f32.mrf.mxu3  ;;  %vm1598_vm6 = vcmp.ge.s32.totalorder %v1588_v25, %v2968_v19  ;;  %vm1606_vm7 = vcmp.lt.s32.totalorder %v1588_v25, %v2973_v12 }
 0x25a   :  { %vm1613_vm8 = vmand %vm1598_vm6, %vm1606_vm7 }
 0x25b   :  { %2056 = vmatmul.msk.f32.vlgmr.msrb.gmra.mxu3 %vm1613_vm8, %v2078_v15 }
 0x25c   :  { %v1315_v21 = vpop.f32.mrf.mxu1 }
 0x25d   :  { %v1316_v49 = vadd.f32 %v2646_v41, %v1315_v21 }
 0x25f   :  { %v1529_v61 = vmax.f32 %v1316_v49, 0.0 }
 0x261   :  { %v2964_v55 = vpop.f32.mrf.mxu3 }
 0x264   :  { %v1318_v52 = vpop.f32.mrf.mxu1 }
 0x265   :  { %v1319_v48 = vadd.f32 %v2646_v41, %v1318_v52  ;;  %v1307_v52 = vadd.f32 %v2646_v41, %v1306_v10  ;;  %v1295_v10 = vadd.f32 %v2646_v41, %v2930_v63 }
 0x269   :  { %v2966_v62 = vpop.f32.mrf.mxu3 }
 0x26c   :  { %v1321_v51 = vpop.f32.mrf.mxu1 }
 0x26d   :  { %v1322_v11 = vadd.f32 %v2646_v41, %v1321_v51  ;;  %v1530_v51 = vmax.f32 %v1319_v48, 0.0  ;;  %v1524_v48 = vmax.f32 %v1301_v47, 0.0  ;;  %v1412_v47 = vadd.f32 %v2646_v41, %v2837_v31 }
 0x26e   :  { %v1589_v31 = vadd.s32 256, %v2970_v7 }
 0x26f   :  { %v1531_v26 = vmax.f32 %v1322_v11, 0.0  ;;  %v1526_v11 = vmax.f32 %v1307_v52, 0.0 }
 0x270   :  { %vm1599_vm9 = vcmp.ge.s32.totalorder %v1589_v31, %v2968_v19  ;;  %vm1607_vm10 = vcmp.lt.s32.totalorder %v1589_v31, %v2973_v12 }
 0x271   :  { %v2984_v37 = vpop.f32.mrf.mxu3  ;;  %vm1614_vm11 = vmand %vm1599_vm9, %vm1607_vm10  ;;  %vm1841_vm9 = vcmask 162816  }
 0x274   :  { %v1324_v33 = vpop.f32.mrf.mxu1 }
 0x275   :  { %v1325_v60 = vadd.f32 %v2646_v41, %v1324_v33  ;;  %v1310_v33 = vadd.f32 %v2646_v41, %v1309_v3  ;;  %v1298_v3 = vadd.f32 %v2646_v41, %v2941_v5 }
 0x277   :  { %v1532_v38 = vmax.f32 %v1325_v60, 0.0  ;;  %v1527_v60 = vmax.f32 %v1310_v33, 0.0  ;;  %v1424_v33 = vadd.f32 %v2646_v41, %v2872_v18 }
 0x27c   :  { %v1327_v0 = vpop.f32.mrf.mxu1 }
 0x27d   :  { %v1328_v1 = vadd.f32 %v2646_v41, %v1327_v0  ;;  %v1304_v0 = vadd.f32 %v2646_v41, %v1303_v23  ;;  %v1292_v23 = vadd.f32 %v2646_v41, %v2914_v36  ;;  %v1520_v36 = vmax.f32 %v1289_v20, 0.0 }
 0x27e   :  { %v1558_v20 = vmax.f32 %v1403_v43, 0.0 }
 0x27f   :  { %v1533_v16 = vmax.f32 %v1328_v1, 0.0  ;;  %v2995_v1 = vpop.f32.mrf.mxu3  ;;  %v1521_v63 = vmax.f32 %v1292_v23, 0.0 }
 0x281   :  { %1676 = vmatpush.msra.mxu2 %v1533_v16  ;;  %v1525_v16 = vmax.f32 %v1304_v0, 0.0  ;;  %v1565_v0 = vmax.f32 %v1424_v33, 0.0 }
 0x283   :  { %1677 = vmatpush.msra.mxu2 %v1532_v38  ;;  %v1523_v38 = vmax.f32 %v1298_v3, 0.0 }
 0x284   :  { %v2987_v24 = vpop.f32.mrf.mxu1 }
 0x285   :  { %1678 = vmatpush.msra.mxu2 %v1531_v26  ;;  %v1522_v26 = vmax.f32 %v1295_v10, 0.0  ;;  %v1561_v10 = vmax.f32 %v1412_v47, 0.0 }
 0x287   :  { %1679 = vmatpush.msra.mxu2 %v1530_v51  ;;  %v3008_v5 = vpop.f32.mrf.mxu3  ;;  %v1283_v51 = vadd.f32 %v2646_v41, %v2864_v9  ;;  %v1415_v9 = vadd.f32 %v2646_v41, %v2843_v8  ;;  %v1406_v8 = vadd.f32 %v2646_v41, %v2825_v13  ;;  %v1400_v13 = vadd.f32 %v2646_v41, %v2809_v2 }
 0x288   :  { %v1556_v2 = vmax.f32 %v1397_v45, 0.0 }
 0x289   :  { %1680 = vmatpush.msra.mxu2 %v1529_v61  ;;  %v1519_v61 = vmax.f32 %v1286_v28, 0.0  ;;  %v1562_v3 = vmax.f32 %v1415_v9, 0.0  ;;  %v1559_v23 = vmax.f32 %v1406_v8, 0.0  ;;  %v1394_v28 = vadd.f32 %v2646_v41, %v2784_v44  ;;  %v3057_v44 = vld [vmem:[%s3169_s4] ss:$0 sm:$0xff] }
 0x28a   :  { %v1475_v25 = vadd.f32 %v3057_v44, %v3008_v5 }
 0x28b   :  { %1681 = vmatpush.msra.mxu2 %v1528_v42  ;;  %v1518_v42 = vmax.f32 %v1283_v51, 0.0  ;;  %v1391_v51 = vadd.f32 %v2646_v41, %v2772_v29  ;;  %v1555_v33 = vmax.f32 %v1394_v28, 0.0  ;;  %v1382_v29 = vadd.f32 %v3057_v44, %v2730_v57 }
 0x28c   :  { %v2993_v21 = vpop.f32.mrf.mxu1  ;;  %v1331_v28 = vadd.f32 %v3057_v44, %v2987_v24  ;;  %v1466_v24 = vadd.f32 %v3057_v44, %v2966_v62  ;;  %v1460_v62 = vadd.f32 %v3057_v44, %v2962_v46  ;;  %v1448_v46 = vadd.f32 %v3057_v44, %v2954_v4 }
 0x28d   :  { %1682 = vmatpush.msra.mxu2 %v1527_v60  ;;  %v1564_v60 = vmax.f32 %v1421_v6, 0.0  ;;  %v1436_v4 = vadd.f32 %v3057_v44, %v2936_v27 }
 0x28f   :  { %1683 = vmatpush.msra.mxu2 %v1526_v11  ;;  %v1477_v18 = vpop.f32.mrf.mxu3  ;;  %v1563_v11 = vmax.f32 %v1418_v39, 0.0 }
 0x290   :  { %v1478_v57 = vadd.f32 %v3057_v44, %v1477_v18 }
 0x291   :  { %1684 = vmatpush.msra.mxu2 %v1525_v16 }
 0x292   :  { %v1583_v43 = vmax.f32 %v1478_v57, 0.0 }
 0x293   :  { %1685 = vmatpush.msra.mxu2 %v1524_v48  ;;  %v1560_v48 = vmax.f32 %v1409_v53, 0.0 }
 0x294   :  { %v3004_v49 = vpop.f32.mrf.mxu1 }
 0x295   :  { %1686 = vmatpush.msra.mxu2 %v1523_v38 }
 0x297   :  { %1687 = vmatpush.msra.mxu2 %v1522_v26  ;;  %v1480_v38 = vpop.f32.mrf.mxu3 }
 0x298   :  { %v1481_v9 = vadd.f32 %v3057_v44, %v1480_v38  ;;  %v1337_v38 = vadd.f32 %v3057_v44, %v3004_v49  ;;  %v1534_v49 = vmax.f32 %v1331_v28, 0.0 }
 0x299   :  { %1688 = vmatpush.msra.mxu2 %v1521_v63  ;;  %v1557_v63 = vmax.f32 %v1400_v13, 0.0  ;;  %v1582_v13 = vmax.f32 %v1475_v25, 0.0 }
 0x29a   :  { %v1584_v8 = vmax.f32 %v1481_v9, 0.0 }
 0x29b   :  { %1689 = vmatpush.msra.mxu2 %v1520_v36  ;;  %v1388_v36 = vadd.f32 %v2646_v41, %v2760_v34  ;;  %v1591_v34 = vadd.s32 512, %v2970_v7  ;;  %v1379_v41 = vadd.f32 %v3057_v44, %v2706_v35 }
 0x29c   :  { %v3018_v52 = vpop.f32.mrf.mxu1 }
 0x29d   :  { %1690 = vmatpush.msra.mxu2 %v1519_v61  ;;  %v1554_v61 = vmax.f32 %v1391_v51, 0.0  ;;  %v1553_v39 = vmax.f32 %v1388_v36, 0.0  ;;  %vm1601_vm12 = vcmp.ge.s32.totalorder %v1591_v34, %v2968_v19  ;;  %vm1609_vm13 = vcmp.lt.s32.totalorder %v1591_v34, %v2973_v12 }
 0x29e   :  { %vm1616_vm14 = vmand %vm1601_vm12, %vm1609_vm13  ;;  %v1340_v5 = vadd.f32 %v3057_v44, %v3018_v52  ;;  %v1536_v52 = vmax.f32 %v1337_v38, 0.0  ;;  %v1812_v38 = vld [vmem:[%s3172_s7 + $0x10] sm:$0xff] }
 0x29f   :  { %1691 = vmatpush.msra.mxu2 %v1518_v42  ;;  %v1483_v42 = vpop.f32.mrf.mxu3 }
 0x2a0   :  { %2057 = vmatmul.msk.f32.vlgmr.msra.gmra.mxu2 %vm1614_vm11, %v2078_v15 }
 0x2a1   :  { %1716 = vmatpush.msrb.mxu2 %v1565_v0  ;;  %v1484_v0 = vadd.f32 %v3057_v44, %v1483_v42 }
 0x2a3   :  { %1717 = vmatpush.msrb.mxu2 %v1564_v60  ;;  %v1551_v60 = vmax.f32 %v1382_v29, 0.0  ;;  %v1585_v47 = vmax.f32 %v1484_v0, 0.0  ;;  %v1577_v29 = vmax.f32 %v1460_v62, 0.0 }
 0x2a4   :  { %v3028_v16 = vpop.f32.mrf.mxu1 }
 0x2a5   :  { %1718 = vmatpush.msrb.mxu2 %v1563_v11  ;;  %v1550_v11 = vmax.f32 %v1379_v41, 0.0  ;;  %v1343_v18 = vadd.f32 %v3057_v44, %v3028_v16  ;;  %v1537_v16 = vmax.f32 %v1340_v5, 0.0 }
 0x2a7   :  { %1719 = vmatpush.msrb.mxu2 %v1562_v3  ;;  %v1538_v45 = vmax.f32 %v1343_v18, 0.0 }
 0x2a9   :  { %1720 = vmatpush.msrb.mxu2 %v1561_v10 }
 0x2ab   :  { %1721 = vmatpush.msrb.mxu2 %v1560_v48 }
 0x2ac   :  { %v1345_v26 = vpop.f32.mrf.mxu1 }
 0x2ad   :  { %1722 = vmatpush.msrb.mxu2 %v1559_v23  ;;  %v1346_v10 = vadd.f32 %v3057_v44, %v1345_v26  ;;  %v1590_v26 = vadd.s32 384, %v2970_v7 }
 0x2af   :  { %1723 = vmatpush.msrb.mxu2 %v1558_v20  ;;  %v1539_v23 = vmax.f32 %v1346_v10, 0.0  ;;  %v1334_v20 = vadd.f32 %v3057_v44, %v2993_v21  ;;  %vm1600_vm15 = vcmp.ge.s32.totalorder %v1590_v26, %v2968_v19  ;;  %vm1608_vm0 = vcmp.lt.s32.totalorder %v1590_v26, %v2973_v12 }
 0x2b0   :  { %v1469_v21 = vadd.f32 %v3057_v44, %v2984_v37  ;;  %vm1615_vm1 = vmand %vm1600_vm15, %vm1608_vm0  ;;  %v2079_v37 = vmov 0.0  }
 0x2b1   :  { %1724 = vmatpush.msrb.mxu2 %v1557_v63  ;;  %v1472_v63 = vadd.f32 %v3057_v44, %v2995_v1  ;;  %v1535_v51 = vmax.f32 %v1334_v20, 0.0  ;;  %v1463_v1 = vadd.f32 %v3057_v44, %v2964_v55  ;;  %v1454_v55 = vadd.f32 %v3057_v44, %v2958_v54  ;;  %v1810_v20 = vld [vmem:[%s3172_s7] sm:$0xff] }
 0x2b2   :  { %v1442_v54 = vadd.f32 %v3057_v44, %v2948_v22  ;;  %v1430_v22 = vadd.f32 %v3057_v44, %v2904_v40 }
 0x2b3   :  { %1725 = vmatpush.msrb.mxu2 %v1556_v2  ;;  %v1593_v2 = vadd.s32 768, %v2970_v7  ;;  %v1581_v36 = vmax.f32 %v1472_v63, 0.0  ;;  %v1578_v42 = vmax.f32 %v1463_v1, 0.0  ;;  %v1575_v0 = vmax.f32 %v1454_v55, 0.0  ;;  %v1653_v40 = vpop.f32.mrf.mxu2  ;;  %v2075_v63 = vld [vmem:[%s3173_s8] ss:$0 sm:$0xff] }
 0x2b4   :  { %v1348_v6 = vpop.f32.mrf.mxu1  ;;  %v1567_v27 = vmax.f32 %v1430_v22, 0.0 }
 0x2b5   :  { %1726 = vmatpush.msrb.mxu2 %v1555_v33  ;;  %v1349_v3 = vadd.f32 %v3057_v44, %v1348_v6  ;;  %vm1603_vm3 = vcmp.ge.s32.totalorder %v1593_v2, %v2968_v19  ;;  %vm1611_vm4 = vcmp.lt.s32.totalorder %v1593_v2, %v2973_v12  ;;  %v1580_v33 = vmax.f32 %v1469_v21, 0.0 }
 0x2b6   :  { %vm1618_vm5 = vmand %vm1603_vm3, %vm1611_vm4  ;;  %v1457_v6 = vadd.f32 %v3057_v44, %v2960_v30  ;;  %v1445_v30 = vadd.f32 %v3057_v44, %v2952_v32  ;;  %v1433_v32 = vadd.f32 %v3057_v44, %v2920_v58 }
 0x2b7   :  { %1727 = vmatpush.msrb.mxu2 %v1554_v61  ;;  %v1540_v48 = vmax.f32 %v1349_v3, 0.0  ;;  %v2054_v59 = vsel %vm1618_vm5, 1.0, %v2079_v37  ;;  %v1579_v61 = vmax.f32 %v1466_v24, 0.0 }
 0x2b8   :  { %v1576_v34 = vmax.f32 %v1457_v6, 0.0  ;;  %v1572_v9 = vmax.f32 %v1445_v30, 0.0 }
 0x2b9   :  { %1728 = vmatpush.msrb.mxu2 %v1553_v39  ;;  %v1451_v39 = vadd.f32 %v3057_v44, %v2956_v14  ;;  %v1439_v14 = vadd.f32 %v3057_v44, %v2944_v17  ;;  %v1427_v17 = vadd.f32 %v3057_v44, %v2888_v50  ;;  %v1780_v50 = vld [vmem:[%s3171_s5 + $0x10] sm:$0xff] }
 0x2bb   :  { %1729 = vmatpush.msrb.mxu2 %v1552_v56  ;;  %v1574_v41 = vmax.f32 %v1451_v39, 0.0  ;;  %v1573_v56 = vmax.f32 %v1448_v46, 0.0  ;;  %v1570_v57 = vmax.f32 %v1439_v14, 0.0  ;;  %v1566_v58 = vmax.f32 %v1427_v17, 0.0 }
 0x2bc   :  { %v1351_v53 = vpop.f32.mrf.mxu1 }
 0x2bd   :  { %1730 = vmatpush.msrb.mxu2 %v1551_v60  ;;  %v1352_v35 = vadd.f32 %v3057_v44, %v1351_v53  ;;  %v1571_v60 = vmax.f32 %v1442_v54, 0.0  ;;  %v1568_v53 = vmax.f32 %v1433_v32, 0.0 }
 0x2bf   :  { %1731 = vmatpush.msrb.mxu2 %v1550_v11  ;;  %v1541_v31 = vmax.f32 %v1352_v35, 0.0  ;;  %v1569_v11 = vmax.f32 %v1436_v4, 0.0 }
 0x2c0   :  { %2059 = vmatmul.msk.f32.vlgmr.msrb.gmra.mxu2 %vm1616_vm14, %v2078_v15 }
 0x2c1   :  { %1768 = vmatpush.msra.mxu2 %v1585_v47  ;;  %1704 = vmatpush.msra.mxu3 %v1541_v31  ;;  %v1592_v47 = vadd.s32 640, %v2970_v7  ;;  %v1781_v7 = vld [vmem:[%s3171_s5 + $0x18] sm:$0xff] }
 0x2c3   :  { %1769 = vmatpush.msra.mxu2 %v1584_v8  ;;  %1705 = vmatpush.msra.mxu3 %v1540_v48  ;;  %vm1602_vm6 = vcmp.ge.s32.totalorder %v1592_v47, %v2968_v19  ;;  %vm1610_vm7 = vcmp.lt.s32.totalorder %v1592_v47, %v2973_v12  ;;  %v1779_v19 = vld [vmem:[%s3171_s5 + $0x8] sm:$0xff]  ;;  %v1778_v12 = vld [vmem:[%s3171_s5] sm:$0xff] }
 0x2c4   :  { %vm1617_vm8 = vmand %vm1602_vm6, %vm1610_vm7 }
 0x2c5   :  { %1770 = vmatpush.msra.mxu2 %v1583_v43  ;;  %1706 = vmatpush.msra.mxu3 %v1539_v23 }
 0x2c7   :  { %1771 = vmatpush.msra.mxu2 %v1582_v13  ;;  %1707 = vmatpush.msra.mxu3 %v1538_v45  ;;  %v1811_v45 = vld [vmem:[%s3172_s7 + $0x8] sm:$0xff] }
 0x2c8   :  { %2061 = vmatmul.msk.f32.vlgmr.msra.gmra.mxu2 %vm868_vm2, %v2054_v59 }
 0x2c9   :  { %1708 = vmatpush.msra.mxu3 %v1537_v16  ;;  %v2074_v16 = vld [vmem:[%s3170_s6] ss:$0 sm:$0xff] }
 0x2cb   :  { %1709 = vmatpush.msra.mxu3 %v1536_v52 }
 0x2cd   :  { %1710 = vmatpush.msra.mxu3 %v1535_v51 }
 0x2cf   :  { %1711 = vmatpush.msra.mxu3 %v1534_v49 }
 0x2d0   :  { %2058 = vmatmul.msk.f32.vlgmr.msra.gmra.mxu3 %vm1615_vm1, %v2078_v15 }
 0x2d1   :  { %1736 = vmatpush.msrb.mxu3 %v1581_v36 }
 0x2d3   :  { %1737 = vmatpush.msrb.mxu3 %v1580_v33 }
 0x2d5   :  { %1738 = vmatpush.msrb.mxu3 %v1579_v61 }
 0x2d7   :  { %1739 = vmatpush.msrb.mxu3 %v1578_v42 }
 0x2d9   :  { %1740 = vmatpush.msrb.mxu3 %v1577_v29 }
 0x2db   :  { %1741 = vmatpush.msrb.mxu3 %v1576_v34 }
 0x2dd   :  { %1742 = vmatpush.msrb.mxu3 %v1575_v0 }
 0x2de   :  { %v1673_v44 = vpop.f32.mrf.mxu3 }
 0x2df   :  { %1743 = vmatpush.msrb.mxu3 %v1574_v41  ;;  %v1674_v35 = vadd.f32 %v1673_v44, %v1653_v40 }
 0x2e1   :  { %1744 = vmatpush.msrb.mxu3 %v1573_v56 }
 0x2e3   :  { %1745 = vmatpush.msrb.mxu3 %v1572_v9 }
 0x2e5   :  { %1746 = vmatpush.msrb.mxu3 %v1571_v60 }
 0x2e7   :  { %1747 = vmatpush.msrb.mxu3 %v1570_v57 }
 0x2e9   :  { %1748 = vmatpush.msrb.mxu3 %v1569_v11 }
 0x2eb   :  { %1749 = vmatpush.msrb.mxu3 %v1568_v53 }
 0x2ed   :  { %1750 = vmatpush.msrb.mxu3 %v1567_v27 }
 0x2ef   :  { %1751 = vmatpush.msrb.mxu3 %v1566_v58 }
 0x2f0   :  { %2060 = vmatmul.msk.f32.vlgmr.msrb.gmra.mxu3 %vm1617_vm8, %v2078_v15  ;;  %v1813_v15 = vld [vmem:[%s3172_s7 + $0x18] sm:$0xff] }
 0x2f1   :  { %1801 = vmatpush.msra.mxu3 %v1781_v7  ;;  %1833 = vmatpush.msrb.mxu2 %v1813_v15 }
 0x2f3   :  { %1802 = vmatpush.msra.mxu3 %v1780_v50  ;;  %1834 = vmatpush.msrb.mxu2 %v1812_v38 }
 0x2f5   :  { %1803 = vmatpush.msra.mxu3 %v1779_v19  ;;  %1835 = vmatpush.msrb.mxu2 %v1811_v45 }
 0x2f7   :  { %1804 = vmatpush.msra.mxu3 %v1778_v12  ;;  %1836 = vmatpush.msrb.mxu2 %v1810_v20 }
 0x323   :  { %v1693_v3 = vpop.f32.mrf.mxu2 }
 0x324   :  { %v1694_v10 = vadd.f32 %v1693_v3, %v1674_v35 }
 0x343   :  { %v1733_v8 = vpop.f32.mrf.mxu2 }
 0x34b   :  { %v1773_v48 = vpop.f32.mrf.mxu2 }
 0x353   :  { %v1713_v25 = vpop.f32.mrf.mxu3 }
 0x354   :  { %v1714_v31 = vadd.f32 %v1713_v25, %v1694_v10 }
 0x356   :  { %v1734_v43 = vadd.f32 %v1733_v8, %v1714_v31 }
 0x373   :  { %v1753_v18 = vpop.f32.mrf.mxu3 }
 0x374   :  { %v1754_v13 = vadd.f32 %v1753_v18, %v1734_v43 }
 0x376   :  { %v1774_v5 = vadd.f32 %v1773_v48, %v1754_v13 }
 0x378   :  { %1776 = vst.msk [vmem:[#allocation2] sm:$0xff] %vm868_vm2, %v1774_v5 }
 0x37f   :  { %v1777_v23 = vld [vmem:[#allocation2] sm:$0xff] }
 0x380   :  { %2062 = vmatmul.msk.f32.vlgmr.msra.gmra.mxu3 %vm868_vm2, %v1777_v23 }
 0x403   :  { %v1806_v26 = vpop.f32.mrf.mxu3 }
 0x404   :  { %v1807_v28 = vadd.f32 %v2074_v16, %v1806_v26 }
 0x406   :  { %v1809_v52 = vmax.f32 %v1807_v28, 0.0 }
 0x408   :  { %2063 = vmatmul.msk.f32.vlgmr.msrb.gmra.mxu2 %vm868_vm2, %v1809_v52 }
 0x48b   :  { %v1838_v51 = vpop.f32.mrf.mxu2 }
 0x48c   :  { %v1839_v21 = vadd.f32 %v2075_v63, %v1838_v51 }
 0x48e   :  { %1842 = vst.msk [vmem:[%s3174_s9] sm:$0xff] %vm1841_vm9, %v1839_v21 }

</bundles_post_ra>
